<compile_context>
chip_gen: v7x
topology: tpu7x:2x2x1
jax: 0.10.0
libtpu: 0.0.40
codegen_flags: <defaults>
</compile_context>

<pallas_src>
import functools

import jax
import jax.numpy as jnp
from jax import lax
from jax.experimental import pallas as pl
from jax.experimental.pallas import tpu as pltpu


def _tpu_vmem_capacity_bytes():
    try:
        info = pltpu.get_tpu_info()
        cap = getattr(info, "vmem_capacity_bytes", None)
        if cap:
            return int(cap)
    except Exception:
        pass
    return 64 << 20  # conservative fallback (v7x physical VMEM per TensorCore)


def _vmem_limit(need_bytes, cap_bytes):
    ceiling = int(cap_bytes * 0.85)          # headroom for Mosaic internal scratch
    return int(max(16 << 20, min(ceiling, int(need_bytes) + (4 << 20))))


# --------------------------------------------------------------------------------------
# Kernel 1: conv3d (taps folded into contraction dim, kd as reduction grid axis) + bias,
#           plus fused per-(n, d) instance-norm partial statistics.
# --------------------------------------------------------------------------------------
def _conv3d_stats_kernel(x_ref, w_ref, b_ref, y_ref, psum_ref, psq_ref, acc_ref,
                         *, H, W, Cin, fold_taps):
    # x_ref   : (1, 1, R_in, Cin)    bf16  one padded depth slice, (h, w) flattened rows
    # w_ref   : (3, 9*Cin, Cpad)     bf16  full weight tensor (resident, one DMA total)
    # b_ref   : (1, Cpad)            f32
    # y_ref   : (1, 1, S_row, Cpad)  bf16  un-normalized conv+bias output
    # psum/psq: (1, 1, 1, Cpad)      f32   per-(n, d) masked sum / sum-of-squares
    # acc_ref : (S_row, Cpad)        f32   VMEM accumulator across the kd reduction axis
    kd = pl.program_id(2)
    Wp = W + 2
    S_row = H * Wp

    @pl.when(kd == 0)
    def _init():
        acc_ref[...] = jnp.zeros_like(acc_ref)

    x = x_ref[0, 0]                                        # (R_in, Cin) bf16, loaded once
    if fold_taps:
        # in-VMEM im2col: concat the 9 contiguous shifted slices along the contraction
        # dim -> one MXU matmul with K = 9*Cin instead of nine K=Cin dots.
        cols = [x[kh * Wp + kw: kh * Wp + kw + S_row, :]
                for kh in range(3) for kw in range(3)]
        xs = jnp.concatenate(cols, axis=-1)                # (S_row, 9*Cin)
        acc_ref[...] += jnp.dot(xs, w_ref[kd], preferred_element_type=jnp.float32)
    else:
        # Cin already MXU-deep: 9 shifted dots, accumulate.
        contrib = None
        for j in range(9):
            kh, kw = j // 3, j % 3
            off = kh * Wp + kw
            xs = x[off:off + S_row, :]                     # (S_row, Cin)
            wj = w_ref[kd, j * Cin:(j + 1) * Cin, :]       # (Cin, Cpad)
            d = jnp.dot(xs, wj, preferred_element_type=jnp.float32)
            contrib = d if contrib is None else contrib + d
        acc_ref[...] += contrib

    @pl.when(kd == pl.num_programs(2) - 1)
    def _finish():
        y = acc_ref[...] + b_ref[...]                      # conv + bias (f32)
        y_ref[0, 0] = y.astype(y_ref.dtype)                # bf16 store (halves HBM bytes)
        # mask the garbage padded-W columns (w' == 0 or w' == W+1) out of the stats;
        # those columns are discarded in the wrapper.
        col = lax.broadcasted_iota(jnp.int32, (S_row, 1), 0) % Wp
        valid = jnp.logical_and(col >= 1, col <= W)
        ym = jnp.where(valid, y, 0.0)
        psum_ref[0, 0] = jnp.sum(ym, axis=0, keepdims=True)
        psq_ref[0, 0] = jnp.sum(ym * ym, axis=0, keepdims=True)


# --------------------------------------------------------------------------------------
# Kernel 2: InstanceNorm3d (from precomputed sums) + LeakyReLU over TD depth slices.
# --------------------------------------------------------------------------------------
def _instnorm_lrelu_kernel(y_ref, sum_ref, sq_ref, o_ref, *, inv_count, eps, slope):
    y = y_ref[0].astype(jnp.float32)                       # (TD, S_row, Cpad)
    mean = sum_ref[0] * inv_count                          # (1, Cpad)
    var = jnp.maximum(sq_ref[0] * inv_count - mean * mean, 0.0)
    inv_std = lax.rsqrt(var + eps)                         # EUP slot
    z = (y - mean) * inv_std
    o_ref[0] = jnp.where(z >= 0, z, slope * z)             # LeakyReLU(0.2)


# --------------------------------------------------------------------------------------
# Wrapper: PyTorch-style NCDHW float32 in / out.
# --------------------------------------------------------------------------------------
def general_conv3d_pallas(x_ncdhw, weight, bias, *, eps=1e-6, negative_slope=0.2):
    """x_ncdhw: (N, Cin, D, H, W); weight: (Cout, Cin, 3, 3, 3); bias: (Cout,)."""
    N, Cin, D, H, W = x_ncdhw.shape
    Cout = weight.shape[0]
    k = weight.shape[2]
    assert weight.shape == (Cout, Cin, k, k, k) and k == 3

    Cpad = ((Cout + 127) // 128) * 128     # lane-dense output channels (unmasked stores)
    Wp = W + 2
    S_row = H * Wp                         # rows per output depth slice
    R_in = (H + 2) * Wp + 2                # rows per padded input depth slice

    cap = _tpu_vmem_capacity_bytes()

    # --- glue: channels-last bf16, zero-pad D/H/W by 1, flatten each padded (h, w)
    #     plane to rows, add one extra zero row front/back so every in-plane (kh, kw)
    #     shift is a contiguous static row slice.
    x_cl = jnp.transpose(x_ncdhw, (0, 2, 3, 4, 1))                       # (N, D, H, W, Cin)
    xp = jnp.pad(x_cl, ((0, 0), (1, 1), (1, 1), (1, 1), (0, 0)))
    xflat = jnp.pad(xp.reshape(N, D + 2, (H + 2) * Wp, Cin),
                    ((0, 0), (0, 0), (1, 1), (0, 0))).astype(jnp.bfloat16)  # (N,D+2,R_in,Cin)

    # weights -> (kd, (kh*3+kw)*Cin + cin, Cpad) bf16 ; bias -> (1, Cpad) f32
    wt = jnp.transpose(weight, (2, 3, 4, 1, 0)).reshape(3, 9 * Cin, Cout)
    wt = jnp.pad(wt, ((0, 0), (0, 0), (0, Cpad - Cout))).astype(jnp.bfloat16)
    bt = jnp.pad(bias, (0, Cpad - Cout)).reshape(1, Cpad).astype(jnp.float32)

    fold_taps = Cin < 128

    # ---------------- pass 1: conv + bias + fused partial instance-norm stats ----------
    need1 = (2 * (R_in * Cin * 2               # x block (bf16), double-buffered
                  + 27 * Cin * Cpad * 2        # resident weights (counted twice, tiny)
                  + Cpad * 4                   # bias
                  + S_row * Cpad * 2           # y block (bf16)
                  + 2 * Cpad * 4)              # psum / psq
             + S_row * Cpad * 4)               # f32 accumulator scratch
    vmem1 = _vmem_limit(need1, cap)

    y_raw, psum, psq = pl.pallas_call(
        functools.partial(_conv3d_stats_kernel, H=H, W=W, Cin=Cin, fold_taps=fold_taps),
        out_shape=(
            jax.ShapeDtypeStruct((N, D, S_row, Cpad), jnp.bfloat16),
            jax.ShapeDtypeStruct((N, D, 1, Cpad), jnp.float32),
            jax.ShapeDtypeStruct((N, D, 1, Cpad), jnp.float32),
        ),
        grid_spec=pltpu.PrefetchScalarGridSpec(
            num_scalar_prefetch=0,
            grid=(N, D, 3),
            in_specs=[
                # padded depth slice d + kd (depth shift expressed as a block index)
                pl.BlockSpec((1, 1, R_in, Cin), lambda n, d, kd: (n, d + kd, 0, 0)),
                # full weight tensor, constant block index -> one DMA total
                pl.BlockSpec((3, 9 * Cin, Cpad), lambda n, d, kd: (0, 0, 0)),
                pl.BlockSpec((1, Cpad), lambda n, d, kd: (0, 0)),
            ],
            out_specs=[
                pl.BlockSpec((1, 1, S_row, Cpad), lambda n, d, kd: (n, d, 0, 0)),
                pl.BlockSpec((1, 1, 1, Cpad), lambda n, d, kd: (n, d, 0, 0)),
                pl.BlockSpec((1, 1, 1, Cpad), lambda n, d, kd: (n, d, 0, 0)),
            ],
            scratch_shapes=[pltpu.VMEM((S_row, Cpad), jnp.float32)],
        ),
        compiler_params=pltpu.CompilerParams(
            dimension_semantics=("parallel", "parallel", "arbitrary"),
            vmem_limit_bytes=vmem1,
        ),
    )(xflat, wt, bt)

    # tiny XLA reduction of per-depth partial stats: (N, D, 1, Cpad) -> (N, 1, Cpad)
    sums = jnp.sum(psum, axis=1)
    sqs = jnp.sum(psq, axis=1)

    # ---------------- pass 2: instance norm + LeakyReLU (TD depth slices / step) -------
    per_d_bytes = S_row * Cpad * (2 + 4)       # bf16 in + f32 out per depth slice
    budget2 = int(cap * 0.5)
    TD = 1
    for cand in range(D, 0, -1):
        if D % cand != 0:
            continue
        if N * (D // cand) < min(2, N * D):    # keep >= 2 parallel steps for megacore
            continue
        if 2 * cand * per_d_bytes + (4 << 20) <= budget2:
            TD = cand
            break
    need2 = 2 * (TD * per_d_bytes + 2 * Cpad * 4)
    vmem2 = _vmem_limit(need2, cap)

    y_nrm = pl.pallas_call(
        functools.partial(_instnorm_lrelu_kernel,
                          inv_count=1.0 / float(D * H * W),
                          eps=float(eps), slope=float(negative_slope)),
        out_shape=jax.ShapeDtypeStruct((N, D, S_row, Cpad), jnp.float32),
        grid_spec=pltpu.PrefetchScalarGridSpec(
            num_scalar_prefetch=0,
            grid=(N, D // TD),
            in_specs=[
                pl.BlockSpec((1, TD, S_row, Cpad), lambda n, d: (n, d, 0, 0)),
                pl.BlockSpec((1, 1, Cpad), lambda n, d: (n, 0, 0)),
                pl.BlockSpec((1, 1, Cpad), lambda n, d: (n, 0, 0)),
            ],
            out_specs=pl.BlockSpec((1, TD, S_row, Cpad), lambda n, d: (n, d, 0, 0)),
        ),
        compiler_params=pltpu.CompilerParams(
            dimension_semantics=("parallel", "parallel"),
            vmem_limit_bytes=vmem2,
        ),
    )(y_raw, sums, sqs)

    # W-unpad, channel slice, NCDHW transpose (XLA fuses these into the layout pass that
    # the NCDHW output requires anyway).
    out = y_nrm.reshape(N, D, H, Wp, Cpad)[:, :, :, 1:W + 1, :Cout]
    return jnp.transpose(out, (0, 4, 1, 2, 3))


def _reference(x_ncdhw, weight, bias, *, eps=1e-6, negative_slope=0.2):
    # pure-JAX (f32) reference of the PyTorch forward for a sanity check
    y = lax.conv_general_dilated(
        x_ncdhw, weight,
        window_strides=(1, 1, 1),
        padding=[(1, 1)] * 3,
        dimension_numbers=("NCDHW", "OIDHW", "NCDHW"),
    ) + bias.reshape(1, -1, 1, 1, 1)
    mean = jnp.mean(y, axis=(2, 3, 4), keepdims=True)
    var = jnp.mean((y - mean) ** 2, axis=(2, 3, 4), keepdims=True)
    y = (y - mean) * lax.rsqrt(var + eps)
    return jnp.where(y >= 0, y, negative_slope * y)


if __name__ == "__main__":
    key = jax.random.PRNGKey(0)
    kx, kw, kb = jax.random.split(key, 3)

    N, Cin, Cout, D, H, W = 2, 4, 8, 8, 8, 8
    x = jax.random.normal(kx, (N, Cin, D, H, W), dtype=jnp.float32)
    weight = 0.1 * jax.random.normal(kw, (Cout, Cin, 3, 3, 3), dtype=jnp.float32)
    bias = 0.1 * jax.random.normal(kb, (Cout,), dtype=jnp.float32)

    out = jax.block_until_ready(general_conv3d_pallas(x, weight, bias))
    ref = _reference(x, weight, bias)

    assert out.shape == (N, Cout, D, H, W)
    max_err = float(jnp.max(jnp.abs(out - ref)))
    # bf16 MXU operands + bf16 y intermediate -> ~1e-2 worst-case vs the f32 reference.
    assert jnp.allclose(out, ref, atol=3e-2, rtol=3e-2), max_err

    print("KERNEL_OK")
</pallas_src>

<mosaic_0001>
module attributes {stable_mosaic.version = 11 : i64} {
  func.func @_conv3d_stats_kernel(%arg0: i32, %arg1: i32, %arg2: i32, %arg3: memref<1x1x102x4xbf16, #tpu.memory_space<vmem>>, %arg4: memref<3x36x128xbf16, #tpu.memory_space<vmem>>, %arg5: memref<1x128xf32, #tpu.memory_space<vmem>>, %arg6: memref<1x1x80x128xbf16, #tpu.memory_space<vmem>>, %arg7: memref<1x1x1x128xf32, #tpu.memory_space<vmem>>, %arg8: memref<1x1x1x128xf32, #tpu.memory_space<vmem>>, %arg9: memref<80x128xf32, #tpu.memory_space<vmem>>) attributes {dimension_semantics = [#tpu.dimension_semantics<parallel>, #tpu.dimension_semantics<parallel>, #tpu.dimension_semantics<arbitrary>], iteration_bounds = array<i64: 2, 8, 3>, scalar_prefetch = 0 : i64, scratch_operands = 1 : i64, tpu.core_type = #tpu.core_type<tc>, window_params = [{transform_indices = @transform_0, window_bounds = array<i64: 1, 1, 102, 4>}, {pipeline_mode = #tpu.pipeline_mode<synchronous>, transform_indices = @transform_1, window_bounds = array<i64: 3, 36, 128>}, {pipeline_mode = #tpu.pipeline_mode<synchronous>, transform_indices = @transform_2, window_bounds = array<i64: 1, 128>}, {transform_indices = @transform_3, window_bounds = array<i64: 1, 1, 80, 128>}, {transform_indices = @transform_4, window_bounds = array<i64: 1, 1, 1, 128>}, {transform_indices = @transform_5, window_bounds = array<i64: 1, 1, 1, 128>}]} {
    %c0_i32 = arith.constant 0 : i32
    %0 = arith.cmpi eq, %arg2, %c0_i32 : i32
    %1 = arith.extui %0 : i1 to i32
    %c0_i32_0 = arith.constant 0 : i32
    %2 = arith.cmpi ne, %1, %c0_i32_0 : i32
    scf.if %2 {
      %cst_11 = arith.constant 0.000000e+00 : f32
      %25 = vector.broadcast %cst_11 : f32 to vector<80x128xf32>
      %c0_12 = arith.constant 0 : index
      %c0_13 = arith.constant 0 : index
      %26 = vector.load %arg9[%c0_12, %c0_13] : memref<80x128xf32, #tpu.memory_space<vmem>>, vector<80x128xf32>
      tpu.vector_store %arg9[%c0_12, %c0_13], %25 {strides = array<i32>} : memref<80x128xf32, #tpu.memory_space<vmem>>, vector<80x128xf32>,
    } else {
    }
    %c0 = arith.constant 0 : index
    %c0_1 = arith.constant 0 : index
    %c0_2 = arith.constant 0 : index
    %c0_3 = arith.constant 0 : index
    %3 = vector.load %arg3[%c0, %c0_1, %c0_2, %c0_3] : memref<1x1x102x4xbf16, #tpu.memory_space<vmem>>, vector<1x1x102x4xbf16>
    %4 = vector.shape_cast %3 : vector<1x1x102x4xbf16> to vector<102x4xbf16>
    %5 = vector.extract_strided_slice %4 {offsets = [0, 0], sizes = [80, 4], strides = [1, 1]} : vector<102x4xbf16> to vector<80x4xbf16>
    %6 = vector.extract_strided_slice %4 {offsets = [1, 0], sizes = [80, 4], strides = [1, 1]} : vector<102x4xbf16> to vector<80x4xbf16>
    %7 = vector.extract_strided_slice %4 {offsets = [2, 0], sizes = [80, 4], strides = [1, 1]} : vector<102x4xbf16> to vector<80x4xbf16>
    %8 = vector.extract_strided_slice %4 {offsets = [10, 0], sizes = [80, 4], strides = [1, 1]} : vector<102x4xbf16> to vector<80x4xbf16>
    %9 = vector.extract_strided_slice %4 {offsets = [11, 0], sizes = [80, 4], strides = [1, 1]} : vector<102x4xbf16> to vector<80x4xbf16>
    %10 = vector.extract_strided_slice %4 {offsets = [12, 0], sizes = [80, 4], strides = [1, 1]} : vector<102x4xbf16> to vector<80x4xbf16>
    %11 = vector.extract_strided_slice %4 {offsets = [20, 0], sizes = [80, 4], strides = [1, 1]} : vector<102x4xbf16> to vector<80x4xbf16>
    %12 = vector.extract_strided_slice %4 {offsets = [21, 0], sizes = [80, 4], strides = [1, 1]} : vector<102x4xbf16> to vector<80x4xbf16>
    %13 = vector.extract_strided_slice %4 {offsets = [22, 0], sizes = [80, 4], strides = [1, 1]} : vector<102x4xbf16> to vector<80x4xbf16>
    %14 = tpu.concatenate %5, %6, %7, %8, %9, %10, %11, %12, %13 in 1 : vector<80x4xbf16>, vector<80x4xbf16>, vector<80x4xbf16>, vector<80x4xbf16>, vector<80x4xbf16>, vector<80x4xbf16>, vector<80x4xbf16>, vector<80x4xbf16>, vector<80x4xbf16> -> vector<80x36xbf16>
    %c0_4 = arith.constant 0 : index
    %c0_5 = arith.constant 0 : index
    %15 = vector.load %arg9[%c0_4, %c0_5] : memref<80x128xf32, #tpu.memory_space<vmem>>, vector<80x128xf32>
    %16 = arith.index_cast %arg2 : i32 to index
    %c0_6 = arith.constant 0 : index
    %c0_7 = arith.constant 0 : index
    %17 = vector.load %arg4[%16, %c0_6, %c0_7] : memref<3x36x128xbf16, #tpu.memory_space<vmem>>, vector<1x36x128xbf16>
    %18 = vector.shape_cast %17 : vector<1x36x128xbf16> to vector<36x128xbf16>
    %cst = arith.constant dense<0.000000e+00> : vector<80x128xf32>
    %19 = tpu.matmul %14, %18, %cst {dimension_numbers = #tpu.dot_dimension_numbers<[1], [0], [0], [1], [0, 0, 1, 1], [], []>} : vector<80x36xbf16>, vector<36x128xbf16>, vector<80x128xf32> -> vector<80x128xf32>
    %20 = arith.addf %15, %19 : vector<80x128xf32>
    %c0_8 = arith.constant 0 : index
    %c0_9 = arith.constant 0 : index
    %21 = vector.load %arg9[%c0_8, %c0_9] : memref<80x128xf32, #tpu.memory_space<vmem>>, vector<80x128xf32>
    tpu.vector_store %arg9[%c0_8, %c0_9], %20 {strides = array<i32>} : memref<80x128xf32, #tpu.memory_space<vmem>>, vector<80x128xf32>,
    %c2_i32 = arith.constant 2 : i32
    %22 = arith.cmpi eq, %arg2, %c2_i32 : i32
    %23 = arith.extui %22 : i1 to i32
    %c0_i32_10 = arith.constant 0 : i32
    %24 = arith.cmpi ne, %23, %c0_i32_10 : i32
    scf.if %24 {
      %c0_11 = arith.constant 0 : index
      %c0_12 = arith.constant 0 : index
      %25 = vector.load %arg9[%c0_11, %c0_12] : memref<80x128xf32, #tpu.memory_space<vmem>>, vector<80x128xf32>
      %c0_13 = arith.constant 0 : index
      %c0_14 = arith.constant 0 : index
      %26 = vector.load %arg5[%c0_13, %c0_14] : memref<1x128xf32, #tpu.memory_space<vmem>>, vector<1x128xf32>
      %27 = vector.broadcast %26 : vector<1x128xf32> to vector<80x128xf32>
      %28 = arith.addf %25, %27 : vector<80x128xf32>
      %29 = arith.truncf %28 : vector<80x128xf32> to vector<80x128xbf16>
      %c0_15 = arith.constant 0 : index
      %c0_16 = arith.constant 0 : index
      %c0_17 = arith.constant 0 : index
      %c0_18 = arith.constant 0 : index
      %30 = vector.load %arg6[%c0_15, %c0_16, %c0_17, %c0_18] : memref<1x1x80x128xbf16, #tpu.memory_space<vmem>>, vector<1x1x80x128xbf16>
      %31 = vector.shape_cast %30 : vector<1x1x80x128xbf16> to vector<80x128xbf16>
      %32 = vector.shape_cast %29 : vector<80x128xbf16> to vector<1x1x80x128xbf16>
      tpu.vector_store %arg6[%c0_15, %c0_16, %c0_17, %c0_18], %32 {strides = array<i32>} : memref<1x1x80x128xbf16, #tpu.memory_space<vmem>>, vector<1x1x80x128xbf16>,
      %33 = tpu.iota {dimensions = array<i32: 0>} : vector<80x1xi32>
      %c10_i32 = arith.constant 10 : i32
      %c0_i32_19 = arith.constant 0 : i32
      %34 = arith.cmpi eq, %c10_i32, %c0_i32_19 : i32
      %c1_i32 = arith.constant 1 : i32
      %35 = arith.select %34, %c1_i32, %c10_i32 : i32
      %36 = vector.broadcast %35 : i32 to vector<80x1xi32>
      %37 = arith.remsi %33, %36 : vector<80x1xi32>
      %c0_i32_20 = arith.constant 0 : i32
      %38 = vector.broadcast %c0_i32_20 : i32 to vector<80x1xi32>
      %39 = arith.cmpi ne, %37, %38 : vector<80x1xi32>
      %c0_i32_21 = arith.constant 0 : i32
      %40 = vector.broadcast %c0_i32_21 : i32 to vector<80x1xi32>
      %41 = arith.cmpi slt, %37, %40 : vector<80x1xi32>
      %c0_i32_22 = arith.constant 0 : i32
      %42 = arith.cmpi slt, %35, %c0_i32_22 : i32
      %43 = vector.broadcast %42 : i1 to vector<80x1xi1>
      %44 = vector.broadcast %43 : vector<80x1xi1> to vector<80x1xi1>
      %45 = arith.xori %41, %44 : vector<80x1xi1>
      %46 = arith.andi %45, %39 : vector<80x1xi1>
      %47 = vector.broadcast %35 : i32 to vector<80x1xi32>
      %48 = arith.addi %37, %47 : vector<80x1xi32>
      %49 = arith.select %46, %48, %37 : vector<80x1xi1>, vector<80x1xi32>
      %c1_i32_23 = arith.constant 1 : i32
      %50 = vector.broadcast %c1_i32_23 : i32 to vector<80x1xi32>
      %51 = arith.cmpi sge, %49, %50 : vector<80x1xi32>
      %c8_i32 = arith.constant 8 : i32
      %52 = vector.broadcast %c8_i32 : i32 to vector<80x1xi32>
      %53 = arith.cmpi sle, %49, %52 : vector<80x1xi32>
      %54 = arith.andi %51, %53 : vector<80x1xi1>
      %cst_24 = arith.constant 0.000000e+00 : f32
      %55 = vector.shape_cast %54 : vector<80x1xi1> to vector<80x1xi1>
      %56 = vector.broadcast %55 : vector<80x1xi1> to vector<80x128xi1>
      %57 = vector.broadcast %cst_24 : f32 to vector<80x128xf32>
      %58 = arith.select %56, %28, %57 : vector<80x128xi1>, vector<80x128xf32>
      %cst_25 = arith.constant dense<0.000000e+00> : vector<128xf32>
      %59 = vector.multi_reduction <add>, %58, %cst_25 [0] : vector<80x128xf32> to vector<128xf32>
      %60 = vector.shape_cast %59 : vector<128xf32> to vector<1x128xf32>
      %c0_26 = arith.constant 0 : index
      %c0_27 = arith.constant 0 : index
      %c0_28 = arith.constant 0 : index
      %c0_29 = arith.constant 0 : index
      %61 = vector.load %arg7[%c0_26, %c0_27, %c0_28, %c0_29] : memref<1x1x1x128xf32, #tpu.memory_space<vmem>>, vector<1x1x1x128xf32>
      %62 = vector.shape_cast %61 : vector<1x1x1x128xf32> to vector<1x128xf32>
      %63 = vector.shape_cast %60 : vector<1x128xf32> to vector<1x1x1x128xf32>
      tpu.vector_store %arg7[%c0_26, %c0_27, %c0_28, %c0_29], %63 {strides = array<i32>} : memref<1x1x1x128xf32, #tpu.memory_space<vmem>>, vector<1x1x1x128xf32>,
      %64 = arith.mulf %58, %58 : vector<80x128xf32>
      %cst_30 = arith.constant dense<0.000000e+00> : vector<128xf32>
      %65 = vector.multi_reduction <add>, %64, %cst_30 [0] : vector<80x128xf32> to vector<128xf32>
      %66 = vector.shape_cast %65 : vector<128xf32> to vector<1x128xf32>
      %c0_31 = arith.constant 0 : index
      %c0_32 = arith.constant 0 : index
      %c0_33 = arith.constant 0 : index
      %c0_34 = arith.constant 0 : index
      %67 = vector.load %arg8[%c0_31, %c0_32, %c0_33, %c0_34] : memref<1x1x1x128xf32, #tpu.memory_space<vmem>>, vector<1x1x1x128xf32>
      %68 = vector.shape_cast %67 : vector<1x1x1x128xf32> to vector<1x128xf32>
      %69 = vector.shape_cast %66 : vector<1x128xf32> to vector<1x1x1x128xf32>
      tpu.vector_store %arg8[%c0_31, %c0_32, %c0_33, %c0_34], %69 {strides = array<i32>} : memref<1x1x1x128xf32, #tpu.memory_space<vmem>>, vector<1x1x1x128xf32>,
    } else {
    }
    return
  }
  func.func @transform_0(%arg0: i32, %arg1: i32, %arg2: i32) -> (i32, i32, i32, i32) {
    %0 = arith.addi %arg1, %arg2 : i32
    %c0_i32 = arith.constant 0 : i32
    %c0_i32_0 = arith.constant 0 : i32
    %c0_i32_1 = arith.constant 0 : i32
    return %arg0, %0, %c0_i32, %c0_i32_0 : i32, i32, i32, i32
  }
  func.func @transform_1(%arg0: i32, %arg1: i32, %arg2: i32) -> (i32, i32, i32) {
    %c0_i32 = arith.constant 0 : i32
    %c0_i32_0 = arith.constant 0 : i32
    %c0_i32_1 = arith.constant 0 : i32
    %c0_i32_2 = arith.constant 0 : i32
    return %c0_i32, %c0_i32_0, %c0_i32_1 : i32, i32, i32
  }
  func.func @transform_2(%arg0: i32, %arg1: i32, %arg2: i32) -> (i32, i32) {
    %c0_i32 = arith.constant 0 : i32
    %c0_i32_0 = arith.constant 0 : i32
    %c0_i32_1 = arith.constant 0 : i32
    return %c0_i32, %c0_i32_0 : i32, i32
  }
  func.func @transform_3(%arg0: i32, %arg1: i32, %arg2: i32) -> (i32, i32, i32, i32) {
    %c0_i32 = arith.constant 0 : i32
    %c0_i32_0 = arith.constant 0 : i32
    %c0_i32_1 = arith.constant 0 : i32
    return %arg0, %arg1, %c0_i32, %c0_i32_0 : i32, i32, i32, i32
  }
  func.func @transform_4(%arg0: i32, %arg1: i32, %arg2: i32) -> (i32, i32, i32, i32) {
    %c0_i32 = arith.constant 0 : i32
    %c0_i32_0 = arith.constant 0 : i32
    %c0_i32_1 = arith.constant 0 : i32
    return %arg0, %arg1, %c0_i32, %c0_i32_0 : i32, i32, i32, i32
  }
  func.func @transform_5(%arg0: i32, %arg1: i32, %arg2: i32) -> (i32, i32, i32, i32) {
    %c0_i32 = arith.constant 0 : i32
    %c0_i32_0 = arith.constant 0 : i32
    %c0_i32_1 = arith.constant 0 : i32
    return %arg0, %arg1, %c0_i32, %c0_i32_0 : i32, i32, i32, i32
  }
}

</mosaic_0001>

<bundles_post_ra>
// kernel: tpu_custom_call.1
= control target key start
LH: loop header
LB: loop body
LE: loop exit
PB: predicated region body
PF: predicated region fallthrough
CT: control target
= control target key end

     0   :  { %s2668_s0 = inlined_call_operand.vmem [shape: bf16[2,10,102,4], index: 0, kind: input, shape index: {}]   ;;  %s2669_s1 = inlined_call_operand.vmem [shape: bf16[3,36,128], index: 1, kind: input, shape index: {}]   ;;  %s2670_s2 = inlined_call_operand.vmem [shape: f32[1,128], index: 2, kind: input, shape index: {}]   ;;  %s2671_s3 = inlined_call_operand.hbm [shape: bf16[2,8,80,128], index: 3, kind: output, shape index: {0}]   ;;  %s2672_s4 = inlined_call_operand.hbm [shape: f32[2,8,1,128], index: 4, kind: output, shape index: {1}]   ;;  %s2673_s5 = inlined_call_operand.hbm [shape: f32[2,8,1,128], index: 5, kind: output, shape index: {2}]  }
   0x1   :  { %2683 = sst [smem:[#allocation15_spill]] %s2668_s0 }
   0x2   :  { %2684 = sst [smem:[#allocation16_spill]] %s2669_s1 }
   0x3   :  { %2685 = sst [smem:[#allocation17_spill]] %s2670_s2 }
   0x4   :  { %2686 = sst [smem:[#allocation18_spill]] %s2672_s4 }
   0x5   :  { %11 = vsyncpa [#allocation4], 0 }
   0x6   :  { %13 = vsyncpa [#allocation4 + $0x1], 0 }
   0x7   :  { %14 = vsyncpa [#allocation6], 0 }
   0x8   :  { %16 = vsyncpa [#allocation6 + $0x1], 0  ;;  %s1908_s18 = smov 0   ;;  %s1910_s19 = smov 0  }
   0x9   :  { %s1912_s20 = smov 0   ;;  %s1914_s21 = smov 0  }
   0xa   :  { %s1916_s22 = smov 0   ;;  %s1918_s23 = smov 0  }
   0xb   :  { %s1920_s24 = smov 0   ;;  %s1922_s25 = smov 0  }
   0xc   :  { %s1924_s26 = smov 0   ;;  %s1926_s27 = smov 0  }
   0xd LB: > { %2687 = sst [smem:[#allocation10_spill]] %s1853_s25  ;;  %s2675_s28 = sadd.s32 4294967295, %s1861_s27   ;;  %s1861_s27 = sphi %s1926_s27, %s22_s27   ;;  %s1857_s26 = sphi %s1924_s26, %s2707_s26   ;;  %s1853_s25 = sphi %s1922_s25, %s2706_s25   ;;  %s1849_s24 = sphi %s1920_s24, %s2712_s24   ;;  %s1845_s23 = sphi %s1918_s23, %s2704_s23   ;;  %s1841_s22 = sphi %s1916_s22, %s2703_s22   ;;  %s1837_s21 = sphi %s1914_s21, %s2711_s21   ;;  %s1833_s20 = sphi %s1912_s20, %s2710_s20   ;;  %s1829_s19 = sphi %s1910_s19, %s2709_s19   ;;  %s1825_s18 = sphi %s1908_s18, %s2708_s18  }
   0xe   : > { %2688 = sst [smem:[#allocation11_spill]] %s1857_s26  ;;  %s2674_s29 = sadd.s32 4294967294, %s1861_s27  }
   0xf   : > { %s34_s30 = sadd.s32 1, %s1849_s24  ;;  %s37_s6 = sadd.s32 1, %s1853_s25 }
  0x10   : > { %p35_p0 = scmp.ge.s32.totalorder %s34_s30, 3  ;;  %s41_s7 = sadd.s32 1, %s1857_s26 }
  0x11   : > { %p132_p1 = scmp.ne.s32.totalorder %s1833_s20, %s1829_s19  ;;  %p133_p2 = scmp.eq.s32.totalorder %s2675_s28, 47 }
  0x12   : > { %s2714_s30 = smov (%p35_p0, %s34_s30), 0  ;;  %s2716_s6 = smov (!%p35_p0, %s37_s6), %s1853_s25 }
  0x13   : > { %2689 = sst [smem:[#allocation12_spill]] %s2714_s30  ;;  %p138_p3 = scmp.ne.s32.totalorder %s1829_s19, %s1825_s18 }
  0x14   : > { %p39_p4 = scmp.ge.s32.totalorder %s2716_s6, 8  ;;  %p139_p5 = scmp.eq.s32.totalorder %s2674_s29, 47 }
  0x15   : > { %p1974_p6 = por %p133_p2, %p132_p1  ;;  %p1415_p8 = scmp.ge.s32.totalorder %s1861_s27, 1 }
  0x16   : > { %s2718_s6 = smov (%p39_p4, %s2716_s6), 0  ;;  %s2720_s7 = smov (!%p39_p4, %s41_s7), %s1857_s26 }
  0x17   : > { %2691 = sst [smem:[#allocation13_spill]] %s2718_s6  ;;  %p1981_p7 = por %p139_p5, %p138_p3 }
  0x18   : > { %p43_p9 = scmp.ge.s32.totalorder %s2720_s7, 2  ;;  %p233_p10 = scmp.lt.s32.totalorder %s1861_s27, 49 }
  0x19   : > { %s118_s10 = ssub.s32 %s1853_s25, %s2718_s6  ;;  %s122_s13 = sadd.s32 1, %s1833_s20 }
  0x1a   : > { %s2722_s7 = smov (%p43_p9, %s2720_s7), 0  ;;  %p234_p11 = pnand %p1415_p8, %p233_p10 }
  0x1b   : > { %2693 = sst [smem:[#allocation14_spill]] %s2722_s7  ;;  %s117_s11 = ssub.s32 %s1857_s26, %s2722_s7 }
  0x1c   : > { %s119_s12 = sor.u32 %s118_s10, %s117_s11  ;;  %237 = sbr.rel (%p234_p11) target bundleno = 594 (0x252), region = 32 }
  0x1d   : > { %p120_p12 = scmp.eq.s32.totalorder %s119_s12, 0  ;;  %s1998_s15 = sand.u32 (!%p234_p11), 1, %s1829_s19  }
  0x1e   : > { %s274_s16 = sadd.s32 (!%p234_p11), %s1837_s21, %s1841_s22  ;;  %s1540_s17 = smul.u32 (!%p234_p11), 40, %s1998_s15 }
  0x1f   : > { %s1995_s14 = scalar_select %p120_p12, %s1833_s20, %s122_s13  }
  0x20   : > { %p275_p13 = scmp.lt.s32.totalorder (!%p234_p11), %s1845_s23, 1  ;;  %p277_p0 = scmp.lt.s32.totalorder (!%p234_p11), %s274_s16, 9 }
  0x21   : > { %s2694_s0 = sld [smem:[#allocation15_spill]] (!%p234_p11)  ;;  %s2010_s30 = scalar_lea.vmem (!%p234_p11), [#allocation3], %s1540_s17 }
  0x22   : > { %s267_s26 = scalar_lea.vmem (!%p234_p11), [#allocation5], %s1998_s15  ;;  %s2681_s25 = scalar_lea.vmem (!%p234_p11), [#allocation7], %s1998_s15 }
  0x23   : > { %s276_s10 = scalar_select %p275_p13, %s1845_s23, 1 }
  0x24   : > { %s2724_s16 = smov (!%p277_p0, %s274_s16), 9  ;;  %p1417_p1 = scmp.ne.s32.totalorder %s1837_s21, 0 }
  0x25   : > { %s1542_s11 = smul.u32 130, %s276_s10  ;;  %v1863_v0 = vmov (!%p1417_p1), 0.0  }
  0x26   : > { %s1541_s12 = smul.u32 13, %s2724_s16  ;;  %290 = vst [vmem:[#allocation2] sm:$0xff] (!%p1417_p1), %v1863_v0  ;;  %291 = vst [vmem:[#allocation2 + $0x8] sm:$0xff] (!%p1417_p1), %v1863_v0 }
  0x27   : > { %289 = sbr.rel (%p1417_p1) target bundleno = 46 (0x2e), region = 36  ;;  %292 = vst [vmem:[#allocation2 + $0x10] sm:$0xff] (!%p1417_p1), %v1863_v0  ;;  %293 = vst [vmem:[#allocation2 + $0x18] sm:$0xff] (!%p1417_p1), %v1863_v0 }
  0x28   : > { %s281_s13 = sadd.s32 %s1542_s11, %s1541_s12  ;;  %294 = vst [vmem:[#allocation2 + $0x20] sm:$0xff] (!%p1417_p1), %v1863_v0  ;;  %295 = vst [vmem:[#allocation2 + $0x28] sm:$0xff] (!%p1417_p1), %v1863_v0 }
  0x29   : > { %s1416_s29 = sshll.u32 %s281_s13, 2  ;;  %296 = vst [vmem:[#allocation2 + $0x30] sm:$0xff] (!%p1417_p1), %v1863_v0  ;;  %297 = vst [vmem:[#allocation2 + $0x38] sm:$0xff] (!%p1417_p1), %v1863_v0 }
  0x2a   : > { %s2008_s6 = scalar_lea.vmem %s2694_s0, %s1416_s29  ;;  %298 = vst [vmem:[#allocation2 + $0x40] sm:$0xff] (!%p1417_p1), %v1863_v0  ;;  %299 = vst [vmem:[#allocation2 + $0x48] sm:$0xff] (!%p1417_p1), %v1863_v0 }
  0x2e PF: > { %v301_v1 = vld [vmem:[%s2008_s6 + $0x4] sm:$0xf]  ;;  %v302_v2 = vld [vmem:[%s2008_s6 + $0x8] sm:$0xf]  ;;  %v303_v3 = vld [vmem:[%s2008_s6 + $0xc] sm:$0xf] }
  0x2f   : > { %v304_v4 = vld [vmem:[%s2008_s6 + $0x10] sm:$0xf]  ;;  %v2020_v5 = vld [vmem:[%s2008_s6 + $0x14] sm:$0xf]  ;;  %v2022_v6 = vcombine.low %v302_v2, %v303_v3  ;;  %v1424_v7 = vcombine.low %v301_v1, %v302_v2  ;;  %vm396_vm0 = vcmask 1046528   ;;  %vm511_vm1 = vcmask 1045504  }
  0x30   : > { %v2025_v8 = vcombine.low %v304_v4, %v2020_v5  ;;  %v2027_v9 = vcombine.low %v303_v3, %v304_v4  ;;  %v300_v10 = vld [vmem:[%s2008_s6] sm:$0xf]  ;;  %vm447_vm2 = vsmask.f32 6400  ;;  %vm602_vm3 = vcmask 1044480   ;;  %s1864_s28 = smov 12  }
  0x31   : > { %v426_v11 = vrot.slane %v1424_v7, 1  ;;  %v2030_v12 = vcombine.low %v300_v10, %v301_v1  ;;  %v398_v13 = vrot.slane %v2022_v6, 1  ;;  %v537_v14 = vrot.slane %v2022_v6, 2  ;;  %s1460_s29 = smul.u32 20, %s1837_s21  ;;  %s1865_s7 = smov 8  }
  0x32   : > { %v427_v15 = vrot.slane %v2027_v9, 1  ;;  %v538_v16 = vrot.slane %v2025_v8, 2  ;;  %v512_v17 = vrot.slane %v1424_v7, 2  ;;  %v513_v18 = vrot.slane %v2027_v9, 2  ;;  %v306_v33 = vld [vmem:[%s2008_s6 + $0x18] sm:$0xf] }
  0x33   : > { %v397_v19 = vrot.slane %v2030_v12, 1  ;;  %v449_v20 = vshrl.u32 %v1424_v7, 16  ;;  %v452_v21 = vshll.u32 %v1424_v7, 16  ;;  %v457_v25 = vshrl.u32 %v2027_v9, 16  ;;  %v307_v38 = vld [vmem:[%s2008_s6 + $0x1c] sm:$0xf] }
  0x34   : > { %v428_v22 = vsel %vm396_vm0, %v426_v11, %v427_v15  ;;  %v539_v23 = vsel %vm511_vm1, %v537_v14, %v538_v16  ;;  %v514_v24 = vsel %vm511_vm1, %v512_v17, %v513_v18  ;;  %v460_v29 = vshll.u32 %v2027_v9, 16  ;;  %v308_v43 = vld [vmem:[%s2008_s6 + $0x20] sm:$0xf]  ;;  %s1866_s16 = smov 24   ;;  %v309_v47 = vld [vmem:[%s2008_s6 + $0x24] sm:$0xf] }
  0x35   : > { %437 = vrot.lane.b32.xlu1 %v428_v22, %s1864_s28  ;;  %v399_v26 = vsel %vm396_vm0, %v397_v19, %v398_v13  ;;  %v451_v27 = vrot.slane %v449_v20, 1  ;;  %v454_v28 = vrot.slane %v452_v21, 2  ;;  %v459_v30 = vrot.slane %v457_v25, 1  ;;  %s2695_s1 = sld [smem:[#allocation16_spill]]  ;;  %s1867_s12 = smov 20  }
  0x36   : > { %408 = vrot.lane.b32.xlu0 %v399_v26, %s1865_s7  ;;  %vm341_vm4 = vsmask.f32 7424  ;;  %v343_v31 = vshrl.u32 %v2030_v12, 16  ;;  %v345_v32 = vshll.u32 %v2030_v12, 16  ;;  %v462_v35 = vrot.slane %v460_v29, 2  ;;  %s1868_s13 = smov 16  }
  0x37   : > { %v455_v34 = vor.u32 %v454_v28, %v451_v27  ;;  %v350_v36 = vshll.u32 %v2022_v6, 16  ;;  %v603_v37 = vrot.slane %v2022_v6, 3  ;;  %v604_v40 = vrot.slane %v2025_v8, 3  ;;  %v2091_v61 = vld [vmem:[%s2008_s6 + $0x28] sm:$0xf]  ;;  %s1870_s17 = smov 32  }
  0x38   : > { %v347_v39 = vrot.slane %v345_v32, 1  ;;  %v354_v41 = vshrl.u32 %v2022_v6, 16  ;;  %v358_v42 = vshll.u32 %v2025_v8, 16  ;;  %v2066_v44 = vor.u32 %v462_v35, %v459_v30  ;;  %s1871_s10 = smov 28   ;;  %p1441_p2 = scmp.ne.s32.totalorder %s1837_s21, 2 }
  0x39   : > { %548 = vrot.lane.b32.xlu1 %v539_v23, %s1866_s16  ;;  %v352_v45 = vrot.slane %v350_v36, 1  ;;  %v362_v46 = vshrl.u32 %v2025_v8, 16  ;;  %vm558_vm5 = vsmask.f32 5376  ;;  %v560_v50 = vrot.slane %v350_v36, 3  ;;  %s2696_s2 = sld [smem:[#allocation17_spill]] (!%p1441_p2) }
  0x3a   : > { %523 = vrot.lane.b32.xlu0 %v514_v24, %s1867_s12  ;;  %v348_v48 = vor.u32 %v347_v39, %v343_v31  ;;  %v559_v49 = vrot.slane %v354_v41, 2  ;;  %v464_v51 = vsel %vm447_vm2, %v455_v34, %v2066_v44  ;;  %v563_v53 = vrot.slane %v358_v42, 3  ;;  %v2150_v39 = vld [vmem:[%s2008_s6 + $0x2c] sm:$0xf] }
  0x3b   : > { %s2073_s11 = scalar_lea.vmem %s2695_s1, %s1460_s29  ;;  %v562_v52 = vrot.slane %v362_v46, 2  ;;  %v2080_v54 = vcombine.low %v306_v33, %v307_v38  ;;  %v2083_v57 = vcombine.low %v308_v43, %v309_v47  ;;  %s2680_s29 = smov 4   ;;  %v605_v62 = vsel %vm602_vm3, %v603_v37, %v604_v40 }
  0x3c   : > { %v353_v55 = vsel %vm341_vm4, %v348_v48, %v352_v45  ;;  %v561_v56 = vor.u32 %v560_v50, %v559_v49  ;;  %v356_v0 = vor.u32 %v354_v41, %v352_v45  ;;  %v2104_v3 = vrot.slane %v358_v42, 1 }
  0x3d   : > { %501 = vrot.lane.b32.xlu1 %v464_v51, %s1868_s13  ;;  %v2086_v58 = vor.u32 %v563_v53, %v562_v52  ;;  %v366_v59 = vshll.u32 %v2080_v54, 16  ;;  %v370_v60 = vshrl.u32 %v2080_v54, 16  ;;  %v374_v63 = vshll.u32 %v2083_v57, 16 }
  0x3e   : > { %386 = vrot.lane.b32.xlu0 %v353_v55, %s2680_s29  ;;  %v2106_v4 = vcombine.low %v307_v38, %v308_v43  ;;  %v2111_v10 = vcombine.low %v309_v47, %v2091_v61  ;;  %v402_v14 = vrot.slane %v2080_v54, 1  ;;  %v404_v17 = vrot.slane %v2083_v57, 1 }
  0x3f   : > { %v565_v1 = vsel %vm558_vm5, %v561_v56, %v2086_v58  ;;  %v2102_v2 = vrot.slane %v366_v59, 1  ;;  %v2108_v7 = vrot.slane %v374_v63, 1  ;;  %v2120_v19 = vcombine.low %v2020_v5, %v306_v33 }
  0x40   : > { %v475_v20 = vshrl.u32 %v2106_v4, 16  ;;  %v478_v21 = vshll.u32 %v2106_v4, 16  ;;  %v484_v22 = vshrl.u32 %v2111_v10, 16  ;;  %v487_v23 = vshll.u32 %v2111_v10, 16 }
  0x41   : > { %614 = vrot.lane.b32.xlu1 %v605_v62, %s1870_s17  ;;  %v372_v11 = vor.u32 %v370_v60, %v2102_v2  ;;  %v361_v25 = vsel %vm341_vm4, %v356_v0, %v2104_v3  ;;  %v400_v5 = vrot.slane %v2025_v8, 1  ;;  %v466_v26 = vshrl.u32 %v2120_v19, 16 }
  0x42   : > { %592 = vrot.lane.b32.xlu0 %v565_v1, %s1871_s10  ;;  %v405_v27 = vsel %vm396_vm0, %v402_v14, %v404_v17  ;;  %v431_v28 = vrot.slane %v2106_v4, 1  ;;  %v433_v29 = vrot.slane %v2111_v10, 1  ;;  %v469_v30 = vshll.u32 %v2120_v19, 16 }
  0x43   : > { %v377_v24 = vsel %vm341_vm4, %v372_v11, %v2108_v7  ;;  %v477_v31 = vrot.slane %v475_v20, 1  ;;  %v480_v32 = vrot.slane %v478_v21, 2  ;;  %v486_v33 = vrot.slane %v484_v22, 1 }
  0x44   : > { %v489_v34 = vrot.slane %v487_v23, 2  ;;  %v401_v35 = vsel %vm396_vm0, %v398_v13, %v400_v5  ;;  %v429_v36 = vrot.slane %v2120_v19, 1  ;;  %v468_v37 = vrot.slane %v466_v26, 1 }
  0x45   : > { %392 = vrot.lane.b32.xlu1 %v377_v24, %s2680_s29  ;;  %v471_v38 = vrot.slane %v469_v30, 2  ;;  %v434_v41 = vsel %vm396_vm0, %v431_v28, %v433_v29  ;;  %v2159_v42 = vor.u32 %v480_v32, %v477_v31  ;;  %v2165_v13 = vcombine.low %v2091_v61, %v2150_v39  ;;  %v1689_v30 = vld [vmem:[%s2073_s11 + $0x8] sm:$0xff]   ;;  %v1690_v32 = vld [vmem:[%s2073_s11 + $0x10] ss:$0 sps:$4 sm:$0x33]  }
  0x46   : > { %388 = vrot.lane.b32.xlu0 %v361_v25, %s2680_s29  ;;  %v2161_v43 = vor.u32 %v489_v34, %v486_v33  ;;  %v430_v45 = vsel %vm396_vm0, %v427_v15, %v429_v36  ;;  %v517_v48 = vrot.slane %v2106_v4, 2  ;;  %v519_v49 = vrot.slane %v2111_v10, 2  ;;  %v1688_v25 = vld [vmem:[%s2073_s11] sm:$0xff]  }
  0x47   : > { %v2172_v47 = vor.u32 %v471_v38, %v468_v37  ;;  %v378_v51 = vshrl.u32 %v2083_v57, 16  ;;  %v575_v52 = vshrl.u32 %v2165_v13, 16  ;;  %v578_v15 = vshll.u32 %v2165_v13, 16 }
  0x48   : > { %v491_v50 = vsel %vm447_vm2, %v2159_v42, %v2161_v43  ;;  %v515_v55 = vrot.slane %v2120_v19, 2  ;;  %v520_v56 = vsel %vm511_vm1, %v517_v48, %v519_v49  ;;  %v542_v62 = vrot.slane %v2083_v57, 2 }
  0x49   : > { %414 = vrot.lane.b32.xlu1 %v405_v27, %s1865_s7  ;;  %v473_v53 = vsel %vm447_vm2, %v2066_v44, %v2172_v47  ;;  %v544_v0 = vrot.slane %v2165_v13, 2  ;;  %v570_v1 = vrot.slane %v378_v51, 2  ;;  %v571_v11 = vrot.slane %v374_v63, 3 }
  0x4a   : > { %410 = vrot.lane.b32.xlu0 %v401_v35, %s1865_s7  ;;  %v577_v20 = vrot.slane %v575_v52, 2  ;;  %v580_v44 = vrot.slane %v578_v15, 3  ;;  %v516_v21 = vsel %vm511_vm1, %v513_v18, %v515_v55  ;;  %v540_v22 = vrot.slane %v2080_v54, 2 }
  0x4b   : > { %v566_v23 = vrot.slane %v370_v60, 2  ;;  %v567_v24 = vrot.slane %v366_v59, 3  ;;  %v545_v9 = vsel %vm511_vm1, %v542_v62, %v544_v0  ;;  %v2215_v18 = vor.u32 %v571_v11, %v570_v1 }
  0x4c   : > { %v2217_v63 = vor.u32 %v580_v44, %v577_v20  ;;  %v1423_v60 = vcombine.low %v2091_v61, %v2091_v61  ;;  %v541_v59 = vsel %vm511_vm1, %v538_v16, %v540_v22  ;;  %v1872_v27 = vmov 0.0   ;;  %v1687_v20 = vld [vmem:[%s2008_s6 + $0x30] ss:$0 sps:$4 sm:$0x77]  }
  0x4d   : > { %443 = vrot.lane.b32.xlu1 %v434_v41, %s1864_s28  ;;  %v2226_v26 = vor.u32 %v567_v24, %v566_v23  ;;  %1508 = vmatprep.subr.bf16.mxu0 %v1872_v27  ;;  %v608_v61 = vrot.slane %v2083_v57, 3  ;;  %v610_v31 = vrot.slane %v2165_v13, 3  ;;  %vm756_vm6 = vcmask 1041408  }
  0x4e   : > { %439 = vrot.lane.b32.xlu0 %v430_v45, %s1864_s28  ;;  %1534 = vmatprep.subr.bf16.mxu1 %v1872_v27  ;;  %v582_v16 = vsel %vm558_vm5, %v2215_v18, %v2217_v63  ;;  %v382_v33 = vshll.u32 %v1423_v60, 16  ;;  %v606_v35 = vrot.slane %v2080_v54, 3  ;;  %vm1873_vm7 = vmmov 0  }
  0x4f   : > { %1509 = vmatpush3.bf16.msra.mxu0 %v1688_v25  ;;  %1537 = vmatpush3.bf16.msra.mxu1 %v1688_v25  ;;  %v569_v34 = vsel %vm558_vm5, %v2086_v58, %v2226_v26  ;;  %v758_v37 = vsel %vm756_vm6, %v1690_v32, 0  ;;  %v611_v58 = vsel %vm602_vm3, %v608_v61, %v610_v31  ;;  %v380_v38 = vor.u32 %v378_v51, %v2108_v7 }
  0x50   : > { %1510 = vmatprep.subr.bf16.mxu0 %v1872_v27  ;;  %1535 = vmatprep.subr.bf16.mxu1 %v1872_v27  ;;  %v384_v41 = vrot.slane %v382_v33, 1  ;;  %v1429_v45 = vcombine.low %v2150_v39, %v2150_v39  ;;  %v364_v52 = vor.u32 %v362_v46, %v2104_v3  ;;  %v406_v39 = vrot.slane %v1423_v60, 1 }
  0x51   : > { %507 = vrot.lane.b32.xlu1 %v491_v50, %s1868_s13  ;;  %1514 = vmatprep.mubr.msk.bf16.mxu0 %vm1873_vm7, %v1872_v27  ;;  %v607_v50 = vsel %vm602_vm3, %v604_v40, %v606_v35  ;;  %v403_v1 = vsel %vm396_vm0, %v400_v5, %v402_v14  ;;  %v584_v44 = vshrl.u32 %v1687_v20, 16  ;;  %v612_v19 = vrot.slane %v1687_v20, 3 }
  0x52   : > { %503 = vrot.lane.b32.xlu0 %v473_v53, %s1868_s13  ;;  %1526 = vmatprep.mubr.msk.bf16.mxu1 %vm1873_vm7, %v1872_v27  ;;  %v385_v7 = vsel %vm341_vm4, %v380_v38, %v384_v41  ;;  %v493_v51 = vshrl.u32 %v1429_v45, 16  ;;  %v496_v15 = vshll.u32 %v1429_v45, 16  ;;  %v369_v53 = vsel %vm341_vm4, %v364_v52, %v2102_v2 }
  0x53   : > { %1511 = vmatpush3.bf16.msra.mxu0 %v1689_v30  ;;  %1538 = vmatpush3.bf16.msra.mxu1 %v1689_v30  ;;  %v407_v40 = vsel %vm396_vm0, %v404_v17, %v406_v39  ;;  %v435_v46 = vrot.slane %v1429_v45, 1  ;;  %v432_v17 = vsel %vm396_vm0, %v429_v36, %v431_v28  ;;  %v521_v5 = vrot.slane %v1429_v45, 2 }
  0x54   : > { %1512 = vmatprep.subr.bf16.mxu0 %v1872_v27  ;;  %1536 = vmatprep.subr.bf16.mxu1 %v1872_v27  ;;  %v495_v3 = vrot.slane %v493_v51, 1  ;;  %v546_v36 = vrot.slane %v1687_v20, 2  ;;  %v586_v23 = vrot.slane %v584_v44, 2  ;;  %vm624_vm8 = vcmask 31744  }
  0x55   : > { %529 = vrot.lane.b32.xlu1 %v520_v56, %s1867_s12  ;;  %v498_v56 = vrot.slane %v496_v15, 2  ;;  %v436_v2 = vsel %vm396_vm0, %v433_v29, %v435_v46  ;;  %v482_v29 = vsel %vm447_vm2, %v2172_v47, %v2159_v42  ;;  %v522_v28 = vsel %vm511_vm1, %v519_v49, %v521_v5 }
  0x56   : > { %525 = vrot.lane.b32.xlu0 %v516_v21, %s1867_s12  ;;  %v587_v21 = vshll.u32 %v1687_v20, 16  ;;  %v547_v42 = vsel %vm511_vm1, %v544_v0, %v546_v36  ;;  %v543_v47 = vsel %vm511_vm1, %v540_v22, %v542_v62  ;;  %v613_v49 = vsel %vm602_vm3, %v610_v31, %v612_v19 }
  0x57   : > { %1513 = vmatpush3.bf16.msra.mxu0 %v758_v37  ;;  %1539 = vmatpush3.bf16.msra.mxu1 %v758_v37  ;;  %v499_v11 = vor.u32 %v498_v56, %v495_v3  ;;  %vm635_vm9 = vcmask 64512   ;;  %vm646_vm10 = vcmask 97280   ;;  %vm657_vm11 = vcmask 130048  }
  0x58   : > { %v589_v24 = vrot.slane %v587_v21, 3  ;;  %vm668_vm12 = vcmask 162816   ;;  %vm679_vm13 = vcmask 195584   ;;  %vm690_vm14 = vcmask 228352  }
  0x59   : > { %554 = vrot.lane.b32.xlu1 %v545_v9, %s1866_s16  ;;  %v500_v14 = vsel %vm447_vm2, %v2161_v43, %v499_v11  ;;  %v518_v43 = vsel %vm511_vm1, %v515_v55, %v517_v48  ;;  %v573_v48 = vsel %vm558_vm5, %v2226_v26, %v2215_v18  ;;  %v609_v55 = vsel %vm602_vm3, %v606_v35, %v608_v61 }
  0x5a   : > { %550 = vrot.lane.b32.xlu0 %v541_v59, %s1866_s16  ;;  %v590_v10 = vor.u32 %v589_v24, %v586_v23  ;;  %vm701_vm15 = vcmask 261120   ;;  %vm745_vm0 = vcmask 293888  }
  0x5c   : > { %v591_v4 = vsel %vm558_vm5, %v2217_v63, %v590_v10 }
  0x5d   : > { %598 = vrot.lane.b32.xlu1 %v582_v16, %s1871_s10 }
  0x5e   : > { %594 = vrot.lane.b32.xlu0 %v569_v34, %s1871_s10 }
  0x61   : > { %620 = vrot.lane.b32.xlu1 %v611_v58, %s1870_s17 }
  0x62   : > { %616 = vrot.lane.b32.xlu0 %v607_v50, %s1870_s17 }
  0x65   : > { %394 = vrot.lane.b32.xlu1 %v385_v7, %s2680_s29 }
  0x66   : > { %390 = vrot.lane.b32.xlu0 %v369_v53, %s2680_s29 }
  0x69   : > { %416 = vrot.lane.b32.xlu1 %v407_v40, %s1865_s7 }
  0x6a   : > { %412 = vrot.lane.b32.xlu0 %v403_v1, %s1865_s7 }
  0x6d   : > { %445 = vrot.lane.b32.xlu1 %v436_v2, %s1864_s28 }
  0x6e   : > { %441 = vrot.lane.b32.xlu0 %v432_v17, %s1864_s28 }
  0x71   : > { %509 = vrot.lane.b32.xlu1 %v500_v14, %s1868_s13 }
  0x72   : > { %505 = vrot.lane.b32.xlu0 %v482_v29, %s1868_s13 }
  0x75   : > { %531 = vrot.lane.b32.xlu1 %v522_v28, %s1867_s12 }
  0x76   : > { %527 = vrot.lane.b32.xlu0 %v518_v43, %s1867_s12 }
  0x79   : > { %556 = vrot.lane.b32.xlu1 %v547_v42, %s1866_s16 }
  0x7a   : > { %552 = vrot.lane.b32.xlu0 %v543_v47, %s1866_s16 }
  0x7d   : > { %600 = vrot.lane.b32.xlu1 %v591_v4, %s1871_s10 }
  0x7e   : > { %596 = vrot.lane.b32.xlu0 %v573_v48, %s1871_s10 }
  0x81   : > { %622 = vrot.lane.b32.xlu1 %v613_v49, %s1870_s17 }
  0x82   : > { %618 = vrot.lane.b32.xlu0 %v609_v55, %s1870_s17 }
  0xa7   : > { %v438_v62 = vpop.permute.xlu1 %437 }
  0xa8   : > { %v409_v0 = vpop.permute.xlu0 %408 }
  0xab   : > { %v549_v22 = vpop.permute.xlu1 %548 }
  0xac   : > { %v524_v25 = vpop.permute.xlu0 %523 }
  0xaf   : > { %v502_v9 = vpop.permute.xlu1 %501 }
  0xb0   : > { %v387_v13 = vpop.permute.xlu0 %386 }
  0xb1   : > { %v626_v18 = vsel %vm624_vm8, %v2030_v12, %v387_v13 }
  0xb2   : > { %v637_v63 = vsel %vm635_vm9, %v626_v18, %v409_v0 }
  0xb3   : > { %v648_v60 = vsel %vm646_vm10, %v637_v63, %v438_v62  ;;  %v615_v59 = vpop.permute.xlu1 %614 }
  0xb4   : > { %v659_v26 = vsel %vm657_vm11, %v648_v60, %v502_v9  ;;  %v593_v30 = vpop.permute.xlu0 %592 }
  0xb5   : > { %v670_v61 = vsel %vm668_vm12, %v659_v26, %v524_v25 }
  0xb6   : > { %v681_v31 = vsel %vm679_vm13, %v670_v61, %v549_v22 }
  0xb7   : > { %v692_v12 = vsel %vm690_vm14, %v681_v31, %v593_v30  ;;  %v393_v32 = vpop.permute.xlu1 %392 }
  0xb8   : > { %v389_v16 = vpop.permute.xlu0 %388  ;;  %v703_v33 = vsel %vm701_vm15, %v692_v12, %v615_v59  ;;  %v632_v39 = vsel %vm624_vm8, %v2080_v54, %v393_v32 }
  0xb9   : > { %1515 = vmatmul.mubr.msk.bf16.vlgmr.msra.gmra.mrb[0].mxu0 %vm745_vm0, %v703_v33  ;;  %v628_v51 = vsel %vm624_vm8, %v2022_v6, %v389_v16  ;;  %v712_v16 = vld [vmem:[#allocation2] sm:$0xff] }
  0xba   : > { %1518 = vmatprep.mubr.msk.bf16.mxu0 %vm1873_vm7, %v1872_v27 }
  0xbb   : > { %v415_v34 = vpop.permute.xlu1 %414 }
  0xbc   : > { %v411_v35 = vpop.permute.xlu0 %410  ;;  %v643_v15 = vsel %vm635_vm9, %v632_v39, %v415_v34  ;;  %v713_v34 = vld [vmem:[#allocation2 + $0x8] sm:$0xff] }
  0xbd   : > { %v639_v53 = vsel %vm635_vm9, %v628_v51, %v411_v35 }
  0xbf   : > { %v444_v37 = vpop.permute.xlu1 %443 }
  0xc0   : > { %v440_v58 = vpop.permute.xlu0 %439  ;;  %v654_v40 = vsel %vm646_vm10, %v643_v15, %v444_v37 }
  0xc1   : > { %v650_v3 = vsel %vm646_vm10, %v639_v53, %v440_v58  ;;  %v715_v53 = vld [vmem:[#allocation2 + $0x18] sm:$0xff] }
  0xc3   : > { %v508_v38 = vpop.permute.xlu1 %507 }
  0xc4   : > { %v504_v41 = vpop.permute.xlu0 %503  ;;  %v665_v56 = vsel %vm657_vm11, %v654_v40, %v508_v38 }
  0xc5   : > { %v661_v2 = vsel %vm657_vm11, %v650_v3, %v504_v41 }
  0xc7   : > { %v530_v45 = vpop.permute.xlu1 %529 }
  0xc8   : > { %v526_v50 = vpop.permute.xlu0 %525  ;;  %v676_v11 = vsel %vm668_vm12, %v665_v56, %v530_v45  ;;  %v718_v45 = vld [vmem:[#allocation2 + $0x30] sm:$0xff] }
  0xc9   : > { %v672_v54 = vsel %vm668_vm12, %v661_v2, %v526_v50  ;;  %v714_v50 = vld [vmem:[#allocation2 + $0x10] sm:$0xff] }
  0xcb   : > { %v555_v52 = vpop.permute.xlu1 %554 }
  0xcc   : > { %v551_v7 = vpop.permute.xlu0 %550  ;;  %v687_v6 = vsel %vm679_vm13, %v676_v11, %v555_v52 }
  0xcd   : > { %v683_v20 = vsel %vm679_vm13, %v672_v54, %v551_v7  ;;  %v719_v7 = vld [vmem:[#allocation2 + $0x38] sm:$0xff] }
  0xcf   : > { %v599_v46 = vpop.permute.xlu1 %598 }
  0xd0   : > { %v595_v1 = vpop.permute.xlu0 %594  ;;  %v698_v17 = vsel %vm690_vm14, %v687_v6, %v599_v46  ;;  %v720_v6 = vld [vmem:[#allocation2 + $0x40] sm:$0xff] }
  0xd1   : > { %v694_v5 = vsel %vm690_vm14, %v683_v20, %v595_v1  ;;  %v716_v20 = vld [vmem:[#allocation2 + $0x20] sm:$0xff] }
  0xd3   : > { %v621_v14 = vpop.permute.xlu1 %620 }
  0xd4   : > { %v709_v44 = vsel %vm701_vm15, %v698_v17, %v621_v14  ;;  %v617_v21 = vpop.permute.xlu0 %616  ;;  %v721_v14 = vld [vmem:[#allocation2 + $0x48] sm:$0xff] }
  0xd5   : > { %v705_v29 = vsel %vm701_vm15, %v694_v5, %v617_v21  ;;  %1527 = vmatmul.mubr.msk.bf16.vlgmr.msra.gmra.mrb[0].mxu1 %vm745_vm0, %v709_v44 }
  0xd6   : > { %1519 = vmatmul.mubr.msk.bf16.gmra.mrb[4].mxu0 %vm745_vm0, %v705_v29  ;;  %1530 = vmatprep.mubr.msk.bf16.mxu1 %vm1873_vm7, %v1872_v27  ;;  %v717_v29 = vld [vmem:[#allocation2 + $0x28] sm:$0xff] }
  0xd7   : > { %v395_v28 = vpop.permute.xlu1 %394  ;;  %1522 = vmatprep.mubr.msk.bf16.mxu0 %vm1873_vm7, %v1872_v27 }
  0xd8   : > { %v391_v36 = vpop.permute.xlu0 %390  ;;  %v634_v55 = vsel %vm624_vm8, %v2083_v57, %v395_v28 }
  0xd9   : > { %v630_v62 = vsel %vm624_vm8, %v2025_v8, %v391_v36 }
  0xdb   : > { %v417_v23 = vpop.permute.xlu1 %416 }
  0xdc   : > { %v413_v24 = vpop.permute.xlu0 %412  ;;  %v645_v0 = vsel %vm635_vm9, %v634_v55, %v417_v23 }
  0xdd   : > { %v641_v27 = vsel %vm635_vm9, %v630_v62, %v413_v24 }
  0xdf   : > { %v446_v43 = vpop.permute.xlu1 %445 }
  0xe0   : > { %v442_v42 = vpop.permute.xlu0 %441  ;;  %v656_v22 = vsel %vm646_vm10, %v645_v0, %v446_v43 }
  0xe1   : > { %v652_v9 = vsel %vm646_vm10, %v641_v27, %v442_v42 }
  0xe3   : > { %v510_v10 = vpop.permute.xlu1 %509 }
  0xe4   : > { %v506_v47 = vpop.permute.xlu0 %505  ;;  %v667_v13 = vsel %vm657_vm11, %v656_v22, %v510_v10 }
  0xe5   : > { %v663_v63 = vsel %vm657_vm11, %v652_v9, %v506_v47 }
  0xe7   : > { %v532_v4 = vpop.permute.xlu1 %531 }
  0xe8   : > { %v528_v19 = vpop.permute.xlu0 %527  ;;  %v678_v60 = vsel %vm668_vm12, %v667_v13, %v532_v4 }
  0xe9   : > { %v674_v57 = vsel %vm668_vm12, %v663_v63, %v528_v19 }
  0xeb   : > { %v557_v48 = vpop.permute.xlu1 %556 }
  0xec   : > { %v553_v49 = vpop.permute.xlu0 %552  ;;  %v689_v8 = vsel %vm679_vm13, %v678_v60, %v557_v48  ;;  %v1442_v48 = vld [vmem:[%s2696_s2] ss:$0 sm:$0xff] (!%p1441_p2) }
  0xed   : > { %v685_v59 = vsel %vm679_vm13, %v674_v57, %v553_v49  ;;  %v934_v49 = vlaneseq (!%p1441_p2) }
  0xef   : > { %v601_v25 = vpop.permute.xlu1 %600 }
  0xf0   : > { %v597_v18 = vpop.permute.xlu0 %596  ;;  %v700_v26 = vsel %vm690_vm14, %v689_v8, %v601_v25  ;;  %v2405_v25 = vshrl.u32 (!%p1441_p2), %v934_v49, 7 }
  0xf1   : > { %v696_v61 = vsel %vm690_vm14, %v685_v59, %v597_v18 }
  0xf3   : > { %v623_v30 = vpop.permute.xlu1 %622 }
  0xf4   : > { %v711_v31 = vsel %vm701_vm15, %v700_v26, %v623_v30  ;;  %v619_v12 = vpop.permute.xlu0 %618 }
  0xf5   : > { %v707_v32 = vsel %vm701_vm15, %v696_v61, %v619_v12  ;;  %1531 = vmatmul.mubr.msk.bf16.gmra.mrb[4].mxu1 %vm745_vm0, %v711_v31  ;;  %v936_v61 = vadd.s32 (!%p1441_p2), 8, %v2405_v25  ;;  %v2423_v31 = vmul.u32.u64.low (!%p1441_p2), 3435973837, %v2405_v25  ;;  %v2424_v12 = vmul.u32.u64.high 3435973837, %v2405_v25, %v2423_v31 }
  0xf6   : > { %1523 = vmatmul.mubr.msk.bf16.gmra.mrb[8].mxu0 %vm745_vm0, %v707_v32 }
 0x18c   : > { %v794_v33 = vpop.f32.mrb[0].mxu0 }
 0x18d   : > { %v833_v35 = vadd.f32 %v794_v33, %v712_v16  ;;  %v1516_v37 = vpop.f32.mrb[1].mxu0  ;;  %v937_v16 = vadd.s32 (!%p1441_p2), 16, %v2405_v25  ;;  %v938_v33 = vadd.s32 (!%p1441_p2), 24, %v2405_v25 }
 0x18e   : > { %v797_v58 = vpop.f32.mrb[2].mxu0 }
 0x18f   : > { %843 = vst [vmem:[#allocation2] sm:$0xff] %v833_v35  ;;  %v834_v38 = vadd.f32 %v797_v58, %v713_v34  ;;  %v1517_v41 = vpop.f32.mrb[3].mxu0  ;;  %v2434_v35 = vadd.s32 (!%p1441_p2), 32, %v2405_v25  ;;  %v2436_v37 = vmul.u32.u64.low (!%p1441_p2), 3435973837, %v936_v61  ;;  %v2437_v58 = vmul.u32.u64.high 3435973837, %v936_v61, %v2436_v37 }
 0x191   : > { %844 = vst [vmem:[#allocation2 + $0x8] sm:$0xff] %v834_v38  ;;  %v2441_v38 = vadd.s32 (!%p1441_p2), 40, %v2405_v25 }
 0x196   : > { %v857_v4 = vld [vmem:[#allocation2] sm:$0xff] (!%p1441_p2) }
 0x197   : > { %v2401_v55 = vadd.f32 (!%p1441_p2), %v1442_v48, %v857_v4 }
 0x198   : > { %v858_v19 = vld [vmem:[#allocation2 + $0x8] sm:$0xff] (!%p1441_p2) }
 0x199   : > { %v2403_v62 = vadd.f32 (!%p1441_p2), %v1442_v48, %v858_v19 }
 0x19b   : > { %v1474_v8 = vpack.c.bf16 (!%p1441_p2), %v2403_v62, %v2401_v55 }
 0x19d   : > { %1475 = vst [vmem:[%s2010_s30] sm:$0xff] (!%p1441_p2), %v1474_v8  }
 0x1a8   : > { %v818_v52 = vpop.f32.mrb[0].mxu1 }
 0x1a9   : > { %v802_v39 = vpop.f32.mrb[4].mxu0  ;;  %v839_v51 = vadd.f32 %v818_v52, %v718_v45  ;;  %v1528_v15 = vpop.f32.mrb[1].mxu1 }
 0x1aa   : > { %v835_v40 = vadd.f32 %v802_v39, %v714_v50  ;;  %v1520_v46 = vpop.f32.mrb[5].mxu0  ;;  %v821_v3 = vpop.f32.mrb[2].mxu1  ;;  %v2445_v50 = vmul.u32.u64.low (!%p1441_p2), 3435973837, %v937_v16  ;;  %v2446_v52 = vmul.u32.u64.high 3435973837, %v937_v16, %v2445_v50 }
 0x1ab   : > { %849 = vst [vmem:[#allocation2 + $0x30] sm:$0xff] %v839_v51  ;;  %v805_v56 = vpop.f32.mrb[6].mxu0  ;;  %v840_v1 = vadd.f32 %v821_v3, %v719_v7  ;;  %v1529_v2 = vpop.f32.mrb[3].mxu1  ;;  %v2448_v7 = vmul.u32.u64.low (!%p1441_p2), 3435973837, %v938_v33  ;;  %v2449_v39 = vmul.u32.u64.high 3435973837, %v938_v33, %v2448_v7  ;;  %v951_v51 = vshrl.u32 (!%p1441_p2), %v2424_v12, 3 }
 0x1ac   : > { %845 = vst [vmem:[#allocation2 + $0x10] sm:$0xff] %v835_v40  ;;  %v836_v11 = vadd.f32 %v805_v56, %v715_v53  ;;  %v1521_v54 = vpop.f32.mrb[7].mxu0  ;;  %v2454_v15 = vmul.u32.u64.low (!%p1441_p2), 3435973837, %v2434_v35  ;;  %v2455_v53 = vmul.u32.u64.high 3435973837, %v2434_v35, %v2454_v15  ;;  %v2459_v40 = vadd.s32 (!%p1441_p2), 48, %v2405_v25 }
 0x1ad   : > { %850 = vst [vmem:[#allocation2 + $0x38] sm:$0xff] %v840_v1  ;;  %v2462_v46 = vmul.u32.u64.low (!%p1441_p2), 3435973837, %v2441_v38  ;;  %v2463_v3 = vmul.u32.u64.high 3435973837, %v2441_v38, %v2462_v46  ;;  %v2466_v56 = vadd.s32 (!%p1441_p2), 56, %v2405_v25  ;;  %v962_v54 = vshrl.u32 (!%p1441_p2), %v2437_v58, 3 }
 0x1ae   : > { %846 = vst [vmem:[#allocation2 + $0x18] sm:$0xff] %v836_v11  ;;  %v952_v11 = vmul.u32 (!%p1441_p2), 10, %v951_v51 }
 0x1b2   : > { %v863_v60 = vld [vmem:[#allocation2 + $0x30] sm:$0xff] (!%p1441_p2) }
 0x1b3   : > { %v859_v0 = vld [vmem:[#allocation2 + $0x10] sm:$0xff] (!%p1441_p2)  ;;  %v2417_v26 = vadd.f32 (!%p1441_p2), %v1442_v48, %v863_v60 }
 0x1b4   : > { %v2407_v9 = vadd.f32 (!%p1441_p2), %v1442_v48, %v859_v0  ;;  %v864_v57 = vld [vmem:[#allocation2 + $0x38] sm:$0xff] (!%p1441_p2) }
 0x1b5   : > { %v860_v27 = vld [vmem:[#allocation2 + $0x18] sm:$0xff] (!%p1441_p2)  ;;  %v2419_v30 = vadd.f32 (!%p1441_p2), %v1442_v48, %v864_v57 }
 0x1b6   : > { %v2409_v13 = vadd.f32 (!%p1441_p2), %v1442_v48, %v860_v27 }
 0x1b7   : > { %v1489_v41 = vpack.c.bf16 (!%p1441_p2), %v2419_v30, %v2417_v26 }
 0x1b8   : > { %v1479_v32 = vpack.c.bf16 (!%p1441_p2), %v2409_v13, %v2407_v9 }
 0x1b9   : > { %1498 = vst [vmem:[%s2010_s30 + $0x18] sm:$0xff] (!%p1441_p2), %v1489_v41  }
 0x1ba   : > { %1496 = vst [vmem:[%s2010_s30 + $0x8] sm:$0xff] (!%p1441_p2), %v1479_v32  }
 0x1c8   : > { %v826_v17 = vpop.f32.mrb[4].mxu1  ;;  %856 = sbr.rel (%p1441_p2) target bundleno = 516 (0x204), region = 40 }
 0x1c9   : > { %v810_v5 = vpop.f32.mrb[8].mxu0  ;;  %v841_v44 = vadd.f32 %v826_v17, %v720_v6  ;;  %v1532_v21 = vpop.f32.mrb[5].mxu1  ;;  %v973_v17 = vshrl.u32 (!%p1441_p2), %v2446_v52, 3 }
 0x1ca   : > { %v837_v28 = vadd.f32 %v810_v5, %v716_v20  ;;  %v1524_v36 = vpop.f32.mrb[9].mxu0  ;;  %v829_v23 = vpop.f32.mrb[6].mxu1  ;;  %v2472_v6 = vmul.u32.u64.low (!%p1441_p2), 3435973837, %v2459_v40  ;;  %v2473_v20 = vmul.u32.u64.high 3435973837, %v2459_v40, %v2472_v6  ;;  %v953_v21 = vsub.s32 (!%p1441_p2), %v2405_v25, %v952_v11 }
 0x1cb   : > { %851 = vst [vmem:[#allocation2 + $0x40] sm:$0xff] %v841_v44  ;;  %v813_v24 = vpop.f32.mrb[10].mxu0  ;;  %v842_v43 = vadd.f32 %v829_v23, %v721_v14  ;;  %v1533_v42 = vpop.f32.mrb[7].mxu1  ;;  %v984_v14 = vshrl.u32 (!%p1441_p2), %v2449_v39, 3  ;;  %v2478_v5 = vmul.u32.u64.low (!%p1441_p2), 3435973837, %v2466_v56  ;;  %v2479_v44 = vmul.u32.u64.high 3435973837, %v2466_v56, %v2478_v5 }
 0x1cc   : > { %847 = vst [vmem:[#allocation2 + $0x20] sm:$0xff] %v837_v28  ;;  %v838_v10 = vadd.f32 %v813_v24, %v717_v29  ;;  %v1525_v47 = vpop.f32.mrb[11].mxu0  ;;  %v963_v29 = vmul.u32 (!%p1441_p2), 10, %v962_v54  ;;  %v995_v28 = vshrl.u32 (!%p1441_p2), %v2455_v53, 3  ;;  %v974_v23 = vmul.u32 (!%p1441_p2), 10, %v973_v17 }
 0x1cd   : > { %852 = vst [vmem:[#allocation2 + $0x48] sm:$0xff] %v842_v43  ;;  %v985_v24 = vmul.u32 (!%p1441_p2), 10, %v984_v14  ;;  %v1006_v43 = vshrl.u32 (!%p1441_p2), %v2463_v3, 3  ;;  %v2487_v42 = vadd.s32 (!%p1441_p2), 64, %v2405_v25  ;;  %vm1055_vm1 = vcmp.ne.s32.totalorder (!%p1441_p2), %v953_v21, 0 }
 0x1ce   : > { %848 = vst [vmem:[#allocation2 + $0x28] sm:$0xff] %v838_v10  ;;  %v964_v10 = vsub.s32 (!%p1441_p2), %v936_v61, %v963_v29  ;;  %vm1065_vm2 = vcmp.lt.s32.totalorder (!%p1441_p2), %v953_v21, 0  ;;  %v1085_v47 = vadd.s32 (!%p1441_p2), 10, %v953_v21  ;;  %v975_v4 = vsub.s32 (!%p1441_p2), %v937_v16, %v974_v23 }
 0x1cf   : > { %vm1075_vm3 = vmand %vm1065_vm2, %vm1055_vm1  ;;  %v986_v19 = vsub.s32 %v938_v33, %v985_v24  ;;  %v996_v49 = vmul.u32 10, %v995_v28  ;;  %v1007_v0 = vmul.u32 10, %v1006_v43  ;;  %v1017_v16 = vshrl.u32 %v2473_v20, 3 }
 0x1d0   : > { %vm1056_vm4 = vcmp.ne.s32.totalorder %v964_v10, 0  ;;  %vm1066_vm5 = vcmp.lt.s32.totalorder %v964_v10, 0  ;;  %v1095_v27 = vsel %vm1075_vm3, %v1085_v47, %v953_v21  ;;  %vm1057_vm9 = vcmp.ne.s32.totalorder %v975_v4, 0 }
 0x1d1   : > { %vm1076_vm6 = vmand %vm1066_vm5, %vm1056_vm4  ;;  %vm1105_vm7 = vcmp.ge.s32.totalorder %v1095_v27, 1  ;;  %vm1115_vm8 = vcmp.le.s32.totalorder %v1095_v27, 8  ;;  %vm1058_vm10 = vcmp.ne.s32.totalorder %v986_v19, 0  ;;  %vm1067_vm12 = vcmp.lt.s32.totalorder %v975_v4, 0 }
 0x1d2   : > { %v865_v45 = vld [vmem:[#allocation2 + $0x40] sm:$0xff]  ;;  %vm1125_vm11 = vmand %vm1105_vm7, %vm1115_vm8  ;;  %vm1068_vm13 = vcmp.lt.s32.totalorder %v986_v19, 0  ;;  %v1088_v57 = vadd.s32 10, %v986_v19  ;;  %v997_v31 = vsub.s32 %v2434_v35, %v996_v49  ;;  %v1008_v12 = vsub.s32 %v2441_v38, %v1007_v0 }
 0x1d3   : > { %v861_v22 = vld [vmem:[#allocation2 + $0x20] sm:$0xff]  ;;  %v2468_v2 = vadd.f32 %v1442_v48, %v865_v45  ;;  %v1155_v60 = vsel %vm1125_vm11, %v2401_v55, 0.0  ;;  %vm1077_vm0 = vmand %vm1067_vm12, %vm1057_vm9  ;;  %v1018_v39 = vmul.u32 10, %v1017_v16  ;;  %v1028_v15 = vshrl.u32 %v2479_v44, 3 }
 0x1d4   : > { %v2411_v63 = vadd.f32 %v1442_v48, %v861_v22  ;;  %v866_v1 = vld [vmem:[#allocation2 + $0x48] sm:$0xff]  ;;  %v1181_v8 = vmul.f32 %v1155_v60, %v1155_v60  ;;  %vm1078_vm2 = vmand %vm1068_vm13, %vm1058_vm10  ;;  %vm1060_vm9 = vcmp.ne.s32.totalorder %v1008_v12, 0  ;;  %vm1069_vm12 = vcmp.lt.s32.totalorder %v997_v31, 0 }
 0x1d5   : > { %v862_v18 = vld [vmem:[#allocation2 + $0x28] sm:$0xff]  ;;  %v2483_v36 = vadd.f32 %v1442_v48, %v866_v1  ;;  %v1098_v55 = vsel %vm1078_vm2, %v1088_v57, %v986_v19  ;;  %vm1070_vm10 = vcmp.lt.s32.totalorder %v1008_v12, 0  ;;  %v1089_v41 = vadd.s32 10, %v997_v31 }
 0x1d6   : > { %v2415_v59 = vadd.f32 %v1442_v48, %v862_v18  ;;  %v1086_v48 = vadd.s32 10, %v964_v10  ;;  %v1087_v18 = vadd.s32 10, %v975_v4  ;;  %vm1108_vm7 = vcmp.ge.s32.totalorder %v1098_v55, 1 }
 0x1d7   : > { %vm1118_vm8 = vcmp.le.s32.totalorder %v1098_v55, 8  ;;  %v1090_v45 = vadd.s32 10, %v1008_v12  ;;  %v1494_v53 = vpack.c.bf16 %v2483_v36, %v2468_v2  ;;  %v1019_v46 = vsub.s32 %v2459_v40, %v1018_v39 }
 0x1d8   : > { %v1484_v34 = vpack.c.bf16 %v2415_v59, %v2411_v63  ;;  %v1096_v22 = vsel %vm1076_vm6, %v1086_v48, %v964_v10  ;;  %v1097_v61 = vsel %vm1077_vm0, %v1087_v18, %v975_v4  ;;  %vm1059_vm6 = vcmp.ne.s32.totalorder %v997_v31, 0  ;;  %vm1128_vm11 = vmand %vm1108_vm7, %vm1118_vm8 }
 0x1d9   : > { %vm1106_vm14 = vcmp.ge.s32.totalorder %v1096_v22, 1  ;;  %vm1116_vm15 = vcmp.le.s32.totalorder %v1096_v22, 8  ;;  %vm1107_vm3 = vcmp.ge.s32.totalorder %v1097_v61, 1  ;;  %vm1117_vm4 = vcmp.le.s32.totalorder %v1097_v61, 8  ;;  %vm1079_vm13 = vmand %vm1069_vm12, %vm1059_vm6  ;;  %1499 = vst [vmem:[%s2010_s30 + $0x20] sm:$0xff] %v1494_v53  }
 0x1da   : > { %1497 = vst [vmem:[%s2010_s30 + $0x10] sm:$0xff] %v1484_v34   ;;  %vm1126_vm1 = vmand %vm1106_vm14, %vm1116_vm15  ;;  %v1158_v38 = vsel %vm1128_vm11, %v2409_v13, 0.0  ;;  %v1029_v3 = vmul.u32 10, %v1028_v15  ;;  %v2505_v11 = vmul.u32.u64.low 3435973837, %v2487_v42  ;;  %v2506_v54 = vmul.u32.u64.high 3435973837, %v2487_v42, %v2505_v11 }
 0x1db   : > { %v1156_v32 = vsel %vm1126_vm1, %v2403_v62, 0.0  ;;  %vm1127_vm5 = vmand %vm1107_vm3, %vm1117_vm4  ;;  %v1184_v52 = vmul.f32 %v1158_v38, %v1158_v38  ;;  %vm1071_vm6 = vcmp.lt.s32.totalorder %v1019_v46, 0  ;;  %v1091_v5 = vadd.s32 10, %v1019_v46 }
 0x1dc   : > { %v1165_v33 = vadd.f32 %v1156_v32, %v1155_v60  ;;  %v1182_v34 = vmul.f32 %v1156_v32, %v1156_v32  ;;  %v1157_v37 = vsel %vm1127_vm5, %v2407_v9, 0.0  ;;  %vm1080_vm14 = vmand %vm1070_vm10, %vm1060_vm9  ;;  %v1099_v9 = vsel %vm1079_vm13, %v1089_v41, %v997_v31 }
 0x1dd   : > { %v1183_v62 = vmul.f32 %v1157_v37, %v1157_v37  ;;  %v1100_v51 = vsel %vm1080_vm14, %v1090_v45, %v1008_v12  ;;  %vm1109_vm15 = vcmp.ge.s32.totalorder %v1099_v9, 1  ;;  %vm1119_vm1 = vcmp.le.s32.totalorder %v1099_v9, 8 }
 0x1de   : > { %v1191_v35 = vadd.f32 %v1182_v34, %v1181_v8  ;;  %v1166_v58 = vadd.f32 %v1165_v33, %v1157_v37  ;;  %vm1110_vm0 = vcmp.ge.s32.totalorder %v1100_v51, 1  ;;  %vm1120_vm2 = vcmp.le.s32.totalorder %v1100_v51, 8  ;;  %vm1129_vm3 = vmand %vm1109_vm15, %vm1119_vm1 }
 0x1df   : > { %vm1130_vm4 = vmand %vm1110_vm0, %vm1120_vm2  ;;  %v1159_v1 = vsel %vm1129_vm3, %v2411_v63, 0.0  ;;  %v1030_v14 = vsub.s32 %v2466_v56, %v1029_v3  ;;  %vm1061_vm5 = vcmp.ne.s32.totalorder %v1019_v46, 0  ;;  %v944_v40 = vadd.s32 72, %v2405_v25 }
 0x1e0   : > { %v1167_v50 = vadd.f32 %v1166_v58, %v1158_v38  ;;  %v1192_v7 = vadd.f32 %v1191_v35, %v1183_v62  ;;  %v1160_v6 = vsel %vm1130_vm4, %v2415_v59, 0.0  ;;  %v1185_v17 = vmul.f32 %v1159_v1, %v1159_v1  ;;  %vm1081_vm9 = vmand %vm1071_vm6, %vm1061_vm5 }
 0x1e1   : > { %v1186_v44 = vmul.f32 %v1160_v6, %v1160_v6  ;;  %vm1062_vm7 = vcmp.ne.s32.totalorder %v1030_v14, 0  ;;  %vm1072_vm8 = vcmp.lt.s32.totalorder %v1030_v14, 0  ;;  %v1092_v63 = vadd.s32 10, %v1030_v14 }
 0x1e2   : > { %v1193_v13 = vadd.f32 %v1192_v7, %v1184_v52  ;;  %v1168_v20 = vadd.f32 %v1167_v50, %v1159_v1  ;;  %vm1082_vm11 = vmand %vm1072_vm8, %vm1062_vm7  ;;  %v1101_v29 = vsel %vm1081_vm9, %v1091_v5, %v1019_v46  ;;  %v1039_v28 = vshrl.u32 %v2506_v54, 3 }
 0x1e3   : > { %vm1111_vm12 = vcmp.ge.s32.totalorder %v1101_v29, 1  ;;  %vm1121_vm10 = vcmp.le.s32.totalorder %v1101_v29, 8  ;;  %v1102_v23 = vsel %vm1082_vm11, %v1092_v63, %v1030_v14 }
 0x1e4   : > { %v1194_v21 = vadd.f32 %v1193_v13, %v1185_v17  ;;  %v1169_v59 = vadd.f32 %v1168_v20, %v1160_v6  ;;  %vm1131_vm13 = vmand %vm1111_vm12, %vm1121_vm10  ;;  %v1040_v56 = vmul.u32 10, %v1039_v28  ;;  %vm1112_vm14 = vcmp.ge.s32.totalorder %v1102_v23, 1 }
 0x1e5   : > { %v2512_v24 = vmul.u32.u64.low 3435973837, %v944_v40  ;;  %v2513_v43 = vmul.u32.u64.high 3435973837, %v944_v40, %v2512_v24  ;;  %vm1122_vm15 = vcmp.le.s32.totalorder %v1102_v23, 8  ;;  %v1161_v10 = vsel %vm1131_vm13, %v2417_v26, 0.0 }
 0x1e6   : > { %v1195_v25 = vadd.f32 %v1194_v21, %v1186_v44  ;;  %vm1132_vm0 = vmand %vm1112_vm14, %vm1122_vm15  ;;  %v1187_v47 = vmul.f32 %v1161_v10, %v1161_v10  ;;  %v1041_v4 = vsub.s32 %v2487_v42, %v1040_v56  ;;  %v1170_v49 = vadd.f32 %v1169_v59, %v1161_v10 }
 0x1e7   : > { %v1162_v19 = vsel %vm1132_vm0, %v2419_v30, 0.0  ;;  %v1050_v48 = vshrl.u32 %v2513_v43, 3 }
 0x1e8   : > { %v1188_v0 = vmul.f32 %v1162_v19, %v1162_v19  ;;  %v1196_v27 = vadd.f32 %v1195_v25, %v1187_v47  ;;  %vm1063_vm1 = vcmp.ne.s32.totalorder %v1041_v4, 0  ;;  %vm1073_vm2 = vcmp.lt.s32.totalorder %v1041_v4, 0 }
 0x1e9   : > { %v1093_v22 = vadd.s32 10, %v1041_v4  ;;  %v1051_v18 = vmul.u32 10, %v1050_v48  ;;  %vm1083_vm3 = vmand %vm1073_vm2, %vm1063_vm1  ;;  %v1171_v57 = vadd.f32 %v1170_v49, %v1162_v19 }
 0x1ea   : > { %v1197_v26 = vadd.f32 %v1196_v27, %v1188_v0 }
 0x1eb   : > { %v1103_v60 = vsel %vm1083_vm3, %v1093_v22, %v1041_v4  ;;  %v1052_v8 = vsub.s32 %v944_v40, %v1051_v18 }
 0x1ec   : > { %vm1113_vm4 = vcmp.ge.s32.totalorder %v1103_v60, 1  ;;  %vm1123_vm5 = vcmp.le.s32.totalorder %v1103_v60, 8 }
 0x1ed   : > { %vm1133_vm6 = vmand %vm1113_vm4, %vm1123_vm5  ;;  %vm1064_vm7 = vcmp.ne.s32.totalorder %v1052_v8, 0  ;;  %vm1074_vm8 = vcmp.lt.s32.totalorder %v1052_v8, 0  ;;  %v1094_v30 = vadd.s32 10, %v1052_v8 }
 0x1ee   : > { %v1163_v42 = vsel %vm1133_vm6, %v2468_v2, 0.0  ;;  %vm1084_vm9 = vmand %vm1074_vm8, %vm1064_vm7 }
 0x1ef   : > { %v1189_v61 = vmul.f32 %v1163_v42, %v1163_v42  ;;  %v1104_v31 = vsel %vm1084_vm9, %v1094_v30, %v1052_v8  ;;  %v1172_v12 = vadd.f32 %v1171_v57, %v1163_v42 }
 0x1f0   : > { %vm1114_vm11 = vcmp.ge.s32.totalorder %v1104_v31, 1  ;;  %vm1124_vm12 = vcmp.le.s32.totalorder %v1104_v31, 8 }
 0x1f1   : > { %vm1134_vm10 = vmand %vm1114_vm11, %vm1124_vm12  ;;  %v1198_v32 = vadd.f32 %v1197_v26, %v1189_v61 }
 0x1f2   : > { %v1164_v16 = vsel %vm1134_vm10, %v2483_v36, 0.0 }
 0x1f3   : > { %v1173_v33 = vadd.f32 %v1172_v12, %v1164_v16  ;;  %v1190_v34 = vmul.f32 %v1164_v16, %v1164_v16 }
 0x1f5   : > { %v1174_v55 = vrot.slane %v1173_v33, 4  ;;  %v1199_v37 = vadd.f32 %v1198_v32, %v1190_v34 }
 0x1f7   : > { %v1175_v35 = vadd.f32 %v1174_v55, %v1173_v33  ;;  %v1200_v58 = vrot.slane %v1199_v37, 4 }
 0x1f9   : > { %v1176_v62 = vrot.slane %v1175_v35, 2  ;;  %v1201_v2 = vadd.f32 %v1200_v58, %v1199_v37 }
 0x1fb   : > { %v1177_v38 = vadd.f32 %v1176_v62, %v1175_v35  ;;  %v1202_v41 = vrot.slane %v1201_v2, 2 }
 0x1fd   : > { %v1178_v45 = vrot.slane %v1177_v38, 1  ;;  %v1203_v50 = vadd.f32 %v1202_v41, %v1201_v2 }
 0x1ff   : > { %v1179_v52 = vadd.f32 %v1178_v45, %v1177_v38  ;;  %v1204_v7 = vrot.slane %v1203_v50, 1 }
 0x201   : > { %1180 = vst [vmem:[%s267_s26] sm:$0x1] %v1179_v52  ;;  %v1205_v39 = vadd.f32 %v1204_v7, %v1203_v50 }
 0x203   : > { %1206 = vst [vmem:[%s2681_s25] sm:$0x1] %v1205_v39 }
 0x204 PF: > { %s2697_s21 = sadd.s32 4294967295, %s1861_s27   ;;  %s1454_s16 = sshll.u32 %s1845_s23, 3 }
 0x205   : > { %s2527_s7 = sand.u32 1, %s2697_s21   ;;  %s2531_s11 = sadd.s32 %s1841_s22, %s1454_s16 }
 0x206   : > { %s2682_s12 = sshll.u32 %s2531_s11, 4  ;;  %s1249_s13 = sshll.u32 %s267_s26, 4  ;;  %s1250_s13 = int_to_ptr.vmem [resolvable:$true] %s1249_s13 }
 0x207   : > { %s2698_s4 = sld [smem:[#allocation18_spill]]  ;;  %s1213_s28 = scalar_lea.sflag [#allocation6], %s2527_s7 }
 0x208   : > { %s1691_s29 = scalar_lea.vmem %s1250_s13, 16  ;;  %s1874_s21 = smov [#allocation5]  }
 0x209   : > { %p1692_p3 = scmp.ne.s32.totalorder %s1250_s13, %s1691_s29  ;;  %s1695_s16 = sshll.u32 %s1874_s21, 4  ;;  %s1696_s16 = int_to_ptr.vmem [resolvable:$false] %s1695_s16 }
 0x20a   : > { %s1697_s25 = scalar_lea.vmem %s1696_s16, 32  ;;  %p1698_p8 = scmp.lt.s32.totalorder %s1250_s13, %s1696_s16 }
 0x20b   : > { %p1693_p4 = pnand %p1692_p3, %p1974_p6  ;;  %p1699_p9 = scmp.lt.s32.totalorder %s1697_s25, %s1691_s29 }
 0x20d   : > { %s2541_s6 = scalar_lea.hbm %s2698_s4, %s2682_s12  ;;  %p1694_p5 = pneg %p1693_p4 }
 0x20e   : > { %p1700_p10 = por %p1699_p9, %p1698_p8 }
 0x210   : > { %p1701_p11 = pnand %p1700_p10, %p1694_p5 }
 0x212   : > { %1704 = shalt.err (!%p1701_p11)
}
 0x213   : > { %s1705_s26 = scalar_lea.hbm %s2541_s6, 16  ;;  %s1709_s21 = scalar_lea.hbm %s2698_s4, 256 }
 0x214   : > { %p1706_p12 = scmp.ne.s32.totalorder %s2541_s6, %s1705_s26  ;;  %p1710_p1 = scmp.lt.u32.totalorder %s2541_s6, %s2698_s4 }
 0x215   : > { %p1711_p2 = scmp.lt.u32.totalorder %s1709_s21, %s1705_s26  ;;  %p1713_p4 = scmp.lt.u32.totalorder %s1705_s26, %s2541_s6 }
 0x216   : > { %p1707_p13 = pnand %p1706_p12, %p1974_p6 }
 0x217   : > { %p1712_p3 = por %p1711_p2, %p1710_p1 }
 0x218   : > { %p1708_p0 = pneg %p1707_p13 }
 0x219   : > { %p1714_p5 = por %p1713_p4, %p1712_p3 }
 0x21b   : > { %p1715_p8 = pnand %p1714_p5, %p1708_p0 }
 0x21d   : > { %1718 = shalt.err (!%p1715_p8)
}
 0x21e   : > { %1566 = dma.vmem_to_hbm [thread:$0]  (%p1974_p6), %s1250_s13, 16, %s2541_s6, %s1213_s28  }
 0x21f   : > { %s1563_s25 = smul.u32 10, %s1841_s22  ;;  %s1231_s12 = sshll.u32 %s2010_s30, 4  ;;  %s2566_s12 = int_to_ptr.vmem [resolvable:$true] %s1231_s12 }
 0x220   : > { %s1564_s29 = smul.u32 80, %s1845_s23  ;;  %s2699_s17 = sshll.u32 %s2531_s11, 4 }
 0x221   : > { %s2573_s16 = scalar_lea.hbm %s2673_s5, %s2699_s17  ;;  %s2700_s1 = scalar_lea.vmem [#allocation7], %s1998_s15 }
 0x222   : > { %s1228_s26 = sadd.s32 %s1564_s29, %s1563_s25  ;;  %s1264_s2 = sshll.u32 %s2700_s1, 4  ;;  %s2582_s2 = int_to_ptr.vmem [resolvable:$true] %s1264_s2 }
 0x223   : > { %s1453_s0 = sshll.u32 %s1228_s26, 6  ;;  %s1208_s23 = scalar_lea.sflag [#allocation4], %s1998_s15 }
 0x224   : > { %s2580_s22 = scalar_lea.hbm %s2671_s3, %s1453_s0  ;;  %s1719_s30 = scalar_lea.vmem %s2566_s12, 640 }
 0x225   : > { %p1720_p9 = scmp.ne.s32.totalorder %s2566_s12, %s1719_s30  ;;  %s1875_s11 = smov [#allocation3]  }
 0x226   : > { %s1723_s6 = sshll.u32 %s1875_s11, 4  ;;  %s1724_s6 = int_to_ptr.vmem [resolvable:$false] %s1723_s6 }
 0x227   : > { %p1721_p10 = pnand %p1720_p9, %p1974_p6  ;;  %s1725_s25 = scalar_lea.vmem %s1724_s6, 1280 }
 0x228   : > { %p1726_p12 = scmp.lt.s32.totalorder %s2566_s12, %s1724_s6  ;;  %p1727_p13 = scmp.lt.s32.totalorder %s1725_s25, %s1719_s30 }
 0x229   : > { %p1722_p11 = pneg %p1721_p10 }
 0x22a   : > { %p1728_p0 = por %p1727_p13, %p1726_p12 }
 0x22c   : > { %p1729_p1 = pnand %p1728_p0, %p1722_p11 }
 0x22e   : > { %1732 = shalt.err (!%p1729_p1)
}
 0x22f   : > { %s1733_s0 = scalar_lea.hbm %s2580_s22, 640  ;;  %s1737_s29 = scalar_lea.hbm %s2671_s3, 10240 }
 0x230   : > { %p1734_p2 = scmp.ne.s32.totalorder %s2580_s22, %s1733_s0  ;;  %p1738_p5 = scmp.lt.u32.totalorder %s2580_s22, %s2671_s3 }
 0x231   : > { %p1739_p8 = scmp.lt.u32.totalorder %s1737_s29, %s1733_s0  ;;  %p1741_p10 = scmp.lt.u32.totalorder %s1733_s0, %s2580_s22 }
 0x232   : > { %p1735_p3 = pnand %p1734_p2, %p1974_p6 }
 0x233   : > { %p1740_p9 = por %p1739_p8, %p1738_p5 }
 0x234   : > { %p1736_p4 = pneg %p1735_p3 }
 0x235   : > { %p1742_p11 = por %p1741_p10, %p1740_p9 }
 0x237   : > { %p1743_p12 = pnand %p1742_p11, %p1736_p4 }
 0x239   : > { %1746 = shalt.err (!%p1743_p12)
}
 0x23a   : > { %s1876_s10 = smov 64   ;;  %s2701_s21 = smov 4  }
 0x23b   : > { %1565 = dma.vmem_to_hbm [thread:$0]  (%p1974_p6), %s2566_s12, 640, %s2580_s22, %s1208_s23, %s1876_s10, %s1876_s10, %s2701_s21  }
 0x23c   : > { %s1747_s13 = scalar_lea.vmem %s2582_s2, 16  ;;  %s1877_s30 = smov [#allocation7]  }
 0x23d   : > { %p1748_p13 = scmp.ne.s32.totalorder %s2582_s2, %s1747_s13  ;;  %s1751_s11 = sshll.u32 %s1877_s30, 4  ;;  %s1752_s11 = int_to_ptr.vmem [resolvable:$false] %s1751_s11 }
 0x23e   : > { %s1753_s6 = scalar_lea.vmem %s1752_s11, 32  ;;  %p1754_p2 = scmp.lt.s32.totalorder %s2582_s2, %s1752_s11 }
 0x23f   : > { %p1749_p0 = pnand %p1748_p13, %p1974_p6  ;;  %p1755_p3 = scmp.lt.s32.totalorder %s1753_s6, %s1747_s13 }
 0x241   : > { %p1750_p1 = pneg %p1749_p0  ;;  %p1756_p4 = por %p1755_p3, %p1754_p2 }
 0x243   : > { %p1757_p5 = pnand %p1756_p4, %p1750_p1 }
 0x245   : > { %1760 = shalt.err (!%p1757_p5)
}
 0x246   : > { %s1761_s15 = scalar_lea.hbm %s2573_s16, 16  ;;  %s1765_s23 = scalar_lea.hbm %s2673_s5, 256 }
 0x247   : > { %p1762_p8 = scmp.ne.s32.totalorder %s2573_s16, %s1761_s15  ;;  %p1766_p11 = scmp.lt.u32.totalorder %s2573_s16, %s2673_s5 }
 0x248   : > { %p1767_p12 = scmp.lt.u32.totalorder %s1765_s23, %s1761_s15  ;;  %p1769_p0 = scmp.lt.u32.totalorder %s1761_s15, %s2573_s16 }
 0x249   : > { %p1763_p9 = pnand %p1762_p8, %p1974_p6 }
 0x24a   : > { %p1768_p13 = por %p1767_p12, %p1766_p11 }
 0x24b   : > { %p1764_p10 = pneg %p1763_p9 }
 0x24c   : > { %p1770_p1 = por %p1769_p0, %p1768_p13 }
 0x24e   : > { %p1771_p2 = pnand %p1770_p1, %p1764_p10 }
 0x250   : > { %1774 = shalt.err (!%p1771_p2)
}
 0x251   : > { %1567 = dma.vmem_to_hbm [thread:$0]  (%p1974_p6), %s2582_s2, 16, %s2573_s16, %s1213_s28  }
 0x252 PF: > { %p1581_p3 = scmp.ge.s32.totalorder %s1861_s27, 2  ;;  %s1276_s1 = sand.u32 1, %s1825_s18  }
 0x253   : > { %s1277_s4 = scalar_lea.sflag [#allocation4], %s1276_s1 }
 0x254   : > { %p1572_p4 = pnand %p1581_p3, %p1981_p7 }
 0x256   : > { %1816 = dma.done.wait (!%p1572_p4), %s1277_s4, 640  }
 0x257   : > { %1818 = vsyncadd (!%p1572_p4), %s1277_s4, 4294966656  ;;  %s2702_s29 = sadd.s32 4294967294, %s1861_s27  }
 0x258   : > { %s1285_s26 = sand.u32 1, %s2702_s29  }
 0x259   : > { %s1286_s8 = scalar_lea.sflag [#allocation6], %s1285_s26 }
 0x25a   : > { %1820 = dma.done.wait (!%p1572_p4), %s1286_s8, 32  }
 0x25b   : > { %1822 = vsyncadd (!%p1572_p4), %s1286_s8, 4294967264  ;;  %s22_s27 = sadd.s32 1, %s1861_s27   ;;  %s2703_s22 = sld [smem:[#allocation10_spill]] }
 0x25c   : > { %p19_p6 = scmp.ge.s32.totalorder %s22_s27, 50   ;;  %s2704_s23 = sld [smem:[#allocation11_spill]] }
 0x25d   : > { %s2705_s2 = sld [smem:[#allocation12_spill]]  ;;  %s2706_s25 = sld [smem:[#allocation13_spill]] }
 0x25e   : > { %s2707_s26 = sld [smem:[#allocation14_spill]]  ;;  %s2708_s18 = smov %s1829_s19 }
 0x25f   : > { %s2709_s19 = smov %s1833_s20  ;;  %s2710_s20 = smov %s1995_s14 }
 0x260   : > { %s2711_s21 = smov %s1849_s24  ;;  %21 = sbr.rel (!%p19_p6) target bundleno = 13 (0xd), region = 108 }
 0x263   : > { %s2712_s24 = smov %s2705_s2 }
 0x267   :  { %1298 = vsyncpa [#allocation4], 1 }
 0x268   :  { %1300 = vsyncpa [#allocation4 + $0x1], 1 }
 0x269   :  { %1301 = vsyncpa [#allocation6], 1 }
 0x26a   :  { %1303 = vsyncpa [#allocation6 + $0x1], 1 }

</bundles_post_ra>
